<compile_context>
chip_gen: v5e
topology: v5e:2x2
jax: 0.10.0
libtpu: 0.0.40
codegen_flags: <defaults>
</compile_context>

<pallas_src>
import numpy as np
import jax
import jax.numpy as jnp
from jax.experimental import pallas as pl
from jax.experimental.pallas import tpu as pltpu


# --------------------------- packed-weight layout -----------------------------
def _slab_layout(input_size, hidden_size, n_layer):
    """Row offsets of each parameter inside the packed (rows, 4H) f32 slab.

    Every section start is 8-row aligned so in-kernel static ref slices begin
    on a sublane-tile boundary.
    """
    H = hidden_size
    state = {"row": 0}

    def take(n_rows):
        start = state["row"]
        state["row"] = ((start + n_rows + 7) // 8) * 8
        return start

    layout = {"layers": []}
    for layer in range(n_layer):
        if layer == 0:
            entry = {"w_ih": take(input_size), "w_hh": take(H), "bias": take(1)}
        else:
            entry = {"w_cat": take(2 * H), "bias": take(1)}
        layout["layers"].append(entry)
    layout["w_out"] = take(1)
    layout["b_out"] = take(1)
    layout["rows"] = state["row"]
    return layout


def pack_params(params, input_size, hidden_size, n_layer):
    """Host-side (init-time) packing of all weights into one f32 slab."""
    H = hidden_size
    G = 4 * H                      # lane width of the slab (128 for H=32)
    layout = _slab_layout(input_size, hidden_size, n_layer)
    slab = np.zeros((layout["rows"], G), np.float32)
    for layer, (lp, off) in enumerate(zip(params["layers"], layout["layers"])):
        if layer == 0:
            slab[off["w_ih"]:off["w_ih"] + input_size] = np.asarray(lp["w_ih_t"])
            slab[off["w_hh"]:off["w_hh"] + H] = np.asarray(lp["w_hh_t"])
        else:
            # Fused [w_ih_t; w_hh_t] so layer>=1 needs a single matmul per step.
            slab[off["w_cat"]:off["w_cat"] + 2 * H] = np.vstack(
                [np.asarray(lp["w_ih_t"]), np.asarray(lp["w_hh_t"])])
        slab[off["bias"]:off["bias"] + 1] = np.asarray(lp["bias"])
    slab[layout["w_out"], :H] = np.asarray(params["w_out_t"])[:, 0]
    slab[layout["b_out"], 0] = float(np.asarray(params["b_out"])[0, 0])
    return jnp.asarray(slab)


# ------------------------- fused full-model kernel ----------------------------
def _make_fused_lstm_kernel(input_size, hidden_size, n_layer):
    H = hidden_size
    G = 4 * H
    layout = _slab_layout(input_size, hidden_size, n_layer)

    def kernel(x_ref, w_ref, o_ref):
        # x_ref: (B, T, D0) batch-first input,  w_ref: packed weight slab,
        # o_ref: (B, 1) model output.
        B, T, D0 = x_ref.shape
        lo0 = layout["layers"][0]

        # --- unpack weights once (static slices; reused by every timestep) ---
        w_ih0 = w_ref[lo0["w_ih"]:lo0["w_ih"] + D0, :]              # (D0, 4H)
        w_hh0 = w_ref[lo0["w_hh"]:lo0["w_hh"] + H, :]               # (H,  4H)
        b0 = w_ref[lo0["bias"]:lo0["bias"] + 1, :]                  # (1,  4H)
        w_cat = [None]
        bias = [None]                                               # bias0 folded below
        for layer in range(1, n_layer):
            off = layout["layers"][layer]
            w_cat.append(w_ref[off["w_cat"]:off["w_cat"] + 2 * H, :])   # (2H, 4H)
            b = w_ref[off["bias"]:off["bias"] + 1, :]                   # (1, 4H)
            bias.append(jnp.broadcast_to(b, (B, G)))                # hoisted broadcast

        # --- hoisted layer-0 input projection (no recurrent dependence) ------
        x2d = x_ref[...].reshape(B * T, D0)                         # free reshape
        x_proj = (jnp.dot(x2d, w_ih0, preferred_element_type=jnp.float32)
                  + jnp.broadcast_to(b0, (B * T, G)))               # bias0 folded once
        x_proj = x_proj.reshape(B, T, G)                            # free reshape

        hs = [jnp.zeros((B, H), jnp.float32) for _ in range(n_layer)]
        cs = [jnp.zeros((B, H), jnp.float32) for _ in range(n_layer)]

        # --- fully-unrolled recurrence (T static; keeps DAG visible to LLO) --
        for t in range(T):
            inp = None
            for layer in range(n_layer):
                if layer == 0:
                    gates = x_proj[:, t, :] + jnp.dot(
                        hs[0], w_hh0, preferred_element_type=jnp.float32)
                else:
                    # 32-lane-aligned concat -> single fused MXU push per step.
                    inp_cat = jnp.concatenate([inp, hs[layer]], axis=-1)   # (B, 2H)
                    gates = jnp.dot(inp_cat, w_cat[layer],
                                    preferred_element_type=jnp.float32) + bias[layer]
                sg = jax.nn.sigmoid(gates)          # whole-(B,4H) EUP pass
                th = jnp.tanh(gates)                # whole-(B,4H) EUP pass
                i_g = sg[:, 0:H]
                f_g = sg[:, H:2 * H]
                g_g = th[:, 2 * H:3 * H]
                o_g = sg[:, 3 * H:4 * H]
                c_new = f_g * cs[layer] + i_g * g_g
                h_new = o_g * jnp.tanh(c_new)
                cs[layer] = c_new
                hs[layer] = h_new
                inp = h_new

        # --- final Linear(hidden, 1) on last step of the top layer -----------
        w_out_row = w_ref[layout["w_out"]:layout["w_out"] + 1, 0:H]     # (1, H)
        b_out = w_ref[layout["b_out"]:layout["b_out"] + 1, 0:1]         # (1, 1)
        o_ref[...] = jnp.sum(hs[-1] * w_out_row, axis=-1, keepdims=True) + b_out

    return kernel


def make_lstm_forward(input_size, hidden_size, n_layer):
    kernel = _make_fused_lstm_kernel(input_size, hidden_size, n_layer)
    vmem_spec = pl.BlockSpec(memory_space=pltpu.MemorySpace.VMEM)

    @jax.jit
    def forward(w_slab, x):
        """x: (batch, seq, input_size) batch-first -> (batch, 1)."""
        B = x.shape[0]
        return pl.pallas_call(
            kernel,
            out_shape=jax.ShapeDtypeStruct((B, 1), jnp.float32),
            in_specs=[vmem_spec, vmem_spec],
            out_specs=vmem_spec,
        )(x.astype(jnp.float32), w_slab)

    return forward


# ------------------------------ parameters ------------------------------------
def init_params(key, input_size, hidden_size, n_layer):
    """Deterministic init mimicking PyTorch's U(-1/sqrt(H), 1/sqrt(H))."""
    k = 1.0 / jnp.sqrt(jnp.float32(hidden_size))
    params = {"layers": []}
    for layer in range(n_layer):
        d_in = input_size if layer == 0 else hidden_size
        key, k1, k2, k3, k4 = jax.random.split(key, 5)
        w_ih = jax.random.uniform(k1, (4 * hidden_size, d_in), jnp.float32, -k, k)
        w_hh = jax.random.uniform(k2, (4 * hidden_size, hidden_size), jnp.float32, -k, k)
        b_ih = jax.random.uniform(k3, (4 * hidden_size,), jnp.float32, -k, k)
        b_hh = jax.random.uniform(k4, (4 * hidden_size,), jnp.float32, -k, k)
        params["layers"].append(
            dict(w_ih_t=w_ih.T,                       # (D, 4H)
                 w_hh_t=w_hh.T,                       # (H, 4H)
                 bias=(b_ih + b_hh).reshape(1, -1)))  # (1, 4H) combined bias
    key, k5, k6 = jax.random.split(key, 3)
    w_out = jax.random.uniform(k5, (1, hidden_size), jnp.float32, -k, k)
    b_out = jax.random.uniform(k6, (1,), jnp.float32, -k, k)
    params["w_out_t"] = w_out.T                       # (H, 1)
    params["b_out"] = b_out.reshape(1, 1)             # (1, 1)
    return params


# -------------------------- pure-JAX reference --------------------------------
def reference_forward(params, x):
    x_tbd = jnp.transpose(x, (1, 0, 2)).astype(jnp.float32)
    T, B, _ = x_tbd.shape
    h_seq = x_tbd
    for layer_p in params["layers"]:
        H = layer_p["w_hh_t"].shape[0]
        h = jnp.zeros((B, H), jnp.float32)
        c = jnp.zeros((B, H), jnp.float32)
        outs = []
        for t in range(T):
            gates = h_seq[t] @ layer_p["w_ih_t"] + h @ layer_p["w_hh_t"] + layer_p["bias"]
            i_g = jax.nn.sigmoid(gates[:, 0:H])
            f_g = jax.nn.sigmoid(gates[:, H:2 * H])
            g_g = jnp.tanh(gates[:, 2 * H:3 * H])
            o_g = jax.nn.sigmoid(gates[:, 3 * H:4 * H])
            c = f_g * c + i_g * g_g
            h = o_g * jnp.tanh(c)
            outs.append(h)
        h_seq = jnp.stack(outs, axis=0)
    return h_seq[-1] @ params["w_out_t"] + params["b_out"]


if __name__ == "__main__":
    # Small shapes implied by the module: batch=2, seq=8, input_size=4,
    # hidden_size=32, n_layer=2, dropout_prob=0.1 (inactive in eval).
    batch, seq, input_size, hidden_size, n_layer = 2, 8, 4, 32, 2

    key = jax.random.PRNGKey(0)
    key, xkey = jax.random.split(key)
    x = jax.random.normal(xkey, (batch, seq, input_size), jnp.float32)

    params = init_params(key, input_size, hidden_size, n_layer)
    w_slab = pack_params(params, input_size, hidden_size, n_layer)

    forward = make_lstm_forward(input_size, hidden_size, n_layer)
    out = jax.block_until_ready(forward(w_slab, x))
    assert out.shape == (batch, 1), out.shape

    ref = jax.block_until_ready(reference_forward(params, x))
    assert jnp.allclose(out, ref, atol=2e-5, rtol=1e-5), (out, ref)

    print("KERNEL_OK")
</pallas_src>

<mosaic_0001>
module attributes {stable_mosaic.version = 11 : i64} {
  func.func @kernel(%arg0: memref<2x8x4xf32, #tpu.memory_space<vmem>>, %arg1: memref<136x128xf32, #tpu.memory_space<vmem>>, %arg2: memref<2x1xf32, #tpu.memory_space<vmem>>) attributes {dimension_semantics = [], scalar_prefetch = 0 : i64, scratch_operands = 0 : i64, tpu.core_type = #tpu.core_type<tc>} {
    %c0 = arith.constant 0 : index
    %c0_0 = arith.constant 0 : index
    %0 = vector.load %arg1[%c0, %c0_0] : memref<136x128xf32, #tpu.memory_space<vmem>>, vector<4x128xf32>
    %c8 = arith.constant 8 : index
    %c0_1 = arith.constant 0 : index
    %1 = vector.load %arg1[%c8, %c0_1] : memref<136x128xf32, #tpu.memory_space<vmem>>, vector<32x128xf32>
    %c40 = arith.constant 40 : index
    %c0_2 = arith.constant 0 : index
    %2 = vector.load %arg1[%c40, %c0_2] : memref<136x128xf32, #tpu.memory_space<vmem>>, vector<1x128xf32>
    %c48 = arith.constant 48 : index
    %c0_3 = arith.constant 0 : index
    %3 = vector.load %arg1[%c48, %c0_3] : memref<136x128xf32, #tpu.memory_space<vmem>>, vector<64x128xf32>
    %c112 = arith.constant 112 : index
    %c0_4 = arith.constant 0 : index
    %4 = vector.load %arg1[%c112, %c0_4] : memref<136x128xf32, #tpu.memory_space<vmem>>, vector<1x128xf32>
    %5 = vector.shape_cast %4 : vector<1x128xf32> to vector<1x128xf32>
    %6 = vector.broadcast %5 : vector<1x128xf32> to vector<2x128xf32>
    %c0_5 = arith.constant 0 : index
    %c0_6 = arith.constant 0 : index
    %c0_7 = arith.constant 0 : index
    %7 = vector.load %arg0[%c0_5, %c0_6, %c0_7] : memref<2x8x4xf32, #tpu.memory_space<vmem>>, vector<2x8x4xf32>
    %8 = vector.shape_cast %7 : vector<2x8x4xf32> to vector<16x4xf32>
    %cst = arith.constant dense<0.000000e+00> : vector<16x128xf32>
    %9 = tpu.matmul %8, %0, %cst {dimension_numbers = #tpu.dot_dimension_numbers<[1], [0], [0], [1], [0, 0, 1, 1], [], []>} : vector<16x4xf32>, vector<4x128xf32>, vector<16x128xf32> -> vector<16x128xf32>
    %10 = vector.shape_cast %2 : vector<1x128xf32> to vector<1x128xf32>
    %11 = vector.broadcast %10 : vector<1x128xf32> to vector<16x128xf32>
    %12 = arith.addf %9, %11 : vector<16x128xf32>
    %13 = vector.shape_cast %12 : vector<16x128xf32> to vector<2x8x128xf32>
    %cst_8 = arith.constant 0.000000e+00 : f32
    %14 = vector.broadcast %cst_8 : f32 to vector<2x32xf32>
    %cst_9 = arith.constant 0.000000e+00 : f32
    %15 = vector.broadcast %cst_9 : f32 to vector<2x32xf32>
    %cst_10 = arith.constant 0.000000e+00 : f32
    %16 = vector.broadcast %cst_10 : f32 to vector<2x32xf32>
    %cst_11 = arith.constant 0.000000e+00 : f32
    %17 = vector.broadcast %cst_11 : f32 to vector<2x32xf32>
    %18 = vector.extract_strided_slice %13 {offsets = [0, 0, 0], sizes = [2, 1, 128], strides = [1, 1, 1]} : vector<2x8x128xf32> to vector<2x1x128xf32>
    %19 = vector.shape_cast %18 : vector<2x1x128xf32> to vector<2x128xf32>
    %cst_12 = arith.constant dense<0.000000e+00> : vector<2x128xf32>
    %20 = tpu.matmul %14, %1, %cst_12 {dimension_numbers = #tpu.dot_dimension_numbers<[1], [0], [0], [1], [0, 0, 1, 1], [], []>} : vector<2x32xf32>, vector<32x128xf32>, vector<2x128xf32> -> vector<2x128xf32>
    %21 = arith.addf %19, %20 : vector<2x128xf32>
    %22 = arith.negf %21 : vector<2x128xf32>
    %23 = math.exp %22 : vector<2x128xf32>
    %cst_13 = arith.constant 1.000000e+00 : f32
    %24 = vector.broadcast %cst_13 : f32 to vector<2x128xf32>
    %25 = arith.addf %24, %23 : vector<2x128xf32>
    %26 = arith.divf %24, %25 : vector<2x128xf32>
    %27 = math.tanh %21 : vector<2x128xf32>
    %28 = vector.extract_strided_slice %26 {offsets = [0, 0], sizes = [2, 32], strides = [1, 1]} : vector<2x128xf32> to vector<2x32xf32>
    %29 = vector.extract_strided_slice %26 {offsets = [0, 32], sizes = [2, 32], strides = [1, 1]} : vector<2x128xf32> to vector<2x32xf32>
    %30 = vector.extract_strided_slice %27 {offsets = [0, 64], sizes = [2, 32], strides = [1, 1]} : vector<2x128xf32> to vector<2x32xf32>
    %31 = vector.extract_strided_slice %26 {offsets = [0, 96], sizes = [2, 32], strides = [1, 1]} : vector<2x128xf32> to vector<2x32xf32>
    %32 = arith.mulf %29, %16 : vector<2x32xf32>
    %33 = arith.mulf %28, %30 : vector<2x32xf32>
    %34 = arith.addf %32, %33 : vector<2x32xf32>
    %35 = math.tanh %34 : vector<2x32xf32>
    %36 = arith.mulf %31, %35 : vector<2x32xf32>
    %37 = tpu.concatenate %36, %15 in 1 : vector<2x32xf32>, vector<2x32xf32> -> vector<2x64xf32>
    %cst_14 = arith.constant dense<0.000000e+00> : vector<2x128xf32>
    %38 = tpu.matmul %37, %3, %cst_14 {dimension_numbers = #tpu.dot_dimension_numbers<[1], [0], [0], [1], [0, 0, 1, 1], [], []>} : vector<2x64xf32>, vector<64x128xf32>, vector<2x128xf32> -> vector<2x128xf32>
    %39 = arith.addf %38, %6 : vector<2x128xf32>
    %40 = arith.negf %39 : vector<2x128xf32>
    %41 = math.exp %40 : vector<2x128xf32>
    %cst_15 = arith.constant 1.000000e+00 : f32
    %42 = vector.broadcast %cst_15 : f32 to vector<2x128xf32>
    %43 = arith.addf %42, %41 : vector<2x128xf32>
    %44 = arith.divf %42, %43 : vector<2x128xf32>
    %45 = math.tanh %39 : vector<2x128xf32>
    %46 = vector.extract_strided_slice %44 {offsets = [0, 0], sizes = [2, 32], strides = [1, 1]} : vector<2x128xf32> to vector<2x32xf32>
    %47 = vector.extract_strided_slice %44 {offsets = [0, 32], sizes = [2, 32], strides = [1, 1]} : vector<2x128xf32> to vector<2x32xf32>
    %48 = vector.extract_strided_slice %45 {offsets = [0, 64], sizes = [2, 32], strides = [1, 1]} : vector<2x128xf32> to vector<2x32xf32>
    %49 = vector.extract_strided_slice %44 {offsets = [0, 96], sizes = [2, 32], strides = [1, 1]} : vector<2x128xf32> to vector<2x32xf32>
    %50 = arith.mulf %47, %17 : vector<2x32xf32>
    %51 = arith.mulf %46, %48 : vector<2x32xf32>
    %52 = arith.addf %50, %51 : vector<2x32xf32>
    %53 = math.tanh %52 : vector<2x32xf32>
    %54 = arith.mulf %49, %53 : vector<2x32xf32>
    %55 = vector.extract_strided_slice %13 {offsets = [0, 1, 0], sizes = [2, 1, 128], strides = [1, 1, 1]} : vector<2x8x128xf32> to vector<2x1x128xf32>
    %56 = vector.shape_cast %55 : vector<2x1x128xf32> to vector<2x128xf32>
    %cst_16 = arith.constant dense<0.000000e+00> : vector<2x128xf32>
    %57 = tpu.matmul %36, %1, %cst_16 {dimension_numbers = #tpu.dot_dimension_numbers<[1], [0], [0], [1], [0, 0, 1, 1], [], []>} : vector<2x32xf32>, vector<32x128xf32>, vector<2x128xf32> -> vector<2x128xf32>
    %58 = arith.addf %56, %57 : vector<2x128xf32>
    %59 = arith.negf %58 : vector<2x128xf32>
    %60 = math.exp %59 : vector<2x128xf32>
    %cst_17 = arith.constant 1.000000e+00 : f32
    %61 = vector.broadcast %cst_17 : f32 to vector<2x128xf32>
    %62 = arith.addf %61, %60 : vector<2x128xf32>
    %63 = arith.divf %61, %62 : vector<2x128xf32>
    %64 = math.tanh %58 : vector<2x128xf32>
    %65 = vector.extract_strided_slice %63 {offsets = [0, 0], sizes = [2, 32], strides = [1, 1]} : vector<2x128xf32> to vector<2x32xf32>
    %66 = vector.extract_strided_slice %63 {offsets = [0, 32], sizes = [2, 32], strides = [1, 1]} : vector<2x128xf32> to vector<2x32xf32>
    %67 = vector.extract_strided_slice %64 {offsets = [0, 64], sizes = [2, 32], strides = [1, 1]} : vector<2x128xf32> to vector<2x32xf32>
    %68 = vector.extract_strided_slice %63 {offsets = [0, 96], sizes = [2, 32], strides = [1, 1]} : vector<2x128xf32> to vector<2x32xf32>
    %69 = arith.mulf %66, %34 : vector<2x32xf32>
    %70 = arith.mulf %65, %67 : vector<2x32xf32>
    %71 = arith.addf %69, %70 : vector<2x32xf32>
    %72 = math.tanh %71 : vector<2x32xf32>
    %73 = arith.mulf %68, %72 : vector<2x32xf32>
    %74 = tpu.concatenate %73, %54 in 1 : vector<2x32xf32>, vector<2x32xf32> -> vector<2x64xf32>
    %cst_18 = arith.constant dense<0.000000e+00> : vector<2x128xf32>
    %75 = tpu.matmul %74, %3, %cst_18 {dimension_numbers = #tpu.dot_dimension_numbers<[1], [0], [0], [1], [0, 0, 1, 1], [], []>} : vector<2x64xf32>, vector<64x128xf32>, vector<2x128xf32> -> vector<2x128xf32>
    %76 = arith.addf %75, %6 : vector<2x128xf32>
    %77 = arith.negf %76 : vector<2x128xf32>
    %78 = math.exp %77 : vector<2x128xf32>
    %cst_19 = arith.constant 1.000000e+00 : f32
    %79 = vector.broadcast %cst_19 : f32 to vector<2x128xf32>
    %80 = arith.addf %79, %78 : vector<2x128xf32>
    %81 = arith.divf %79, %80 : vector<2x128xf32>
    %82 = math.tanh %76 : vector<2x128xf32>
    %83 = vector.extract_strided_slice %81 {offsets = [0, 0], sizes = [2, 32], strides = [1, 1]} : vector<2x128xf32> to vector<2x32xf32>
    %84 = vector.extract_strided_slice %81 {offsets = [0, 32], sizes = [2, 32], strides = [1, 1]} : vector<2x128xf32> to vector<2x32xf32>
    %85 = vector.extract_strided_slice %82 {offsets = [0, 64], sizes = [2, 32], strides = [1, 1]} : vector<2x128xf32> to vector<2x32xf32>
    %86 = vector.extract_strided_slice %81 {offsets = [0, 96], sizes = [2, 32], strides = [1, 1]} : vector<2x128xf32> to vector<2x32xf32>
    %87 = arith.mulf %84, %52 : vector<2x32xf32>
    %88 = arith.mulf %83, %85 : vector<2x32xf32>
    %89 = arith.addf %87, %88 : vector<2x32xf32>
    %90 = math.tanh %89 : vector<2x32xf32>
    %91 = arith.mulf %86, %90 : vector<2x32xf32>
    %92 = vector.extract_strided_slice %13 {offsets = [0, 2, 0], sizes = [2, 1, 128], strides = [1, 1, 1]} : vector<2x8x128xf32> to vector<2x1x128xf32>
    %93 = vector.shape_cast %92 : vector<2x1x128xf32> to vector<2x128xf32>
    %cst_20 = arith.constant dense<0.000000e+00> : vector<2x128xf32>
    %94 = tpu.matmul %73, %1, %cst_20 {dimension_numbers = #tpu.dot_dimension_numbers<[1], [0], [0], [1], [0, 0, 1, 1], [], []>} : vector<2x32xf32>, vector<32x128xf32>, vector<2x128xf32> -> vector<2x128xf32>
    %95 = arith.addf %93, %94 : vector<2x128xf32>
    %96 = arith.negf %95 : vector<2x128xf32>
    %97 = math.exp %96 : vector<2x128xf32>
    %cst_21 = arith.constant 1.000000e+00 : f32
    %98 = vector.broadcast %cst_21 : f32 to vector<2x128xf32>
    %99 = arith.addf %98, %97 : vector<2x128xf32>
    %100 = arith.divf %98, %99 : vector<2x128xf32>
    %101 = math.tanh %95 : vector<2x128xf32>
    %102 = vector.extract_strided_slice %100 {offsets = [0, 0], sizes = [2, 32], strides = [1, 1]} : vector<2x128xf32> to vector<2x32xf32>
    %103 = vector.extract_strided_slice %100 {offsets = [0, 32], sizes = [2, 32], strides = [1, 1]} : vector<2x128xf32> to vector<2x32xf32>
    %104 = vector.extract_strided_slice %101 {offsets = [0, 64], sizes = [2, 32], strides = [1, 1]} : vector<2x128xf32> to vector<2x32xf32>
    %105 = vector.extract_strided_slice %100 {offsets = [0, 96], sizes = [2, 32], strides = [1, 1]} : vector<2x128xf32> to vector<2x32xf32>
    %106 = arith.mulf %103, %71 : vector<2x32xf32>
    %107 = arith.mulf %102, %104 : vector<2x32xf32>
    %108 = arith.addf %106, %107 : vector<2x32xf32>
    %109 = math.tanh %108 : vector<2x32xf32>
    %110 = arith.mulf %105, %109 : vector<2x32xf32>
    %111 = tpu.concatenate %110, %91 in 1 : vector<2x32xf32>, vector<2x32xf32> -> vector<2x64xf32>
    %cst_22 = arith.constant dense<0.000000e+00> : vector<2x128xf32>
    %112 = tpu.matmul %111, %3, %cst_22 {dimension_numbers = #tpu.dot_dimension_numbers<[1], [0], [0], [1], [0, 0, 1, 1], [], []>} : vector<2x64xf32>, vector<64x128xf32>, vector<2x128xf32> -> vector<2x128xf32>
    %113 = arith.addf %112, %6 : vector<2x128xf32>
    %114 = arith.negf %113 : vector<2x128xf32>
    %115 = math.exp %114 : vector<2x128xf32>
    %cst_23 = arith.constant 1.000000e+00 : f32
    %116 = vector.broadcast %cst_23 : f32 to vector<2x128xf32>
    %117 = arith.addf %116, %115 : vector<2x128xf32>
    %118 = arith.divf %116, %117 : vector<2x128xf32>
    %119 = math.tanh %113 : vector<2x128xf32>
    %120 = vector.extract_strided_slice %118 {offsets = [0, 0], sizes = [2, 32], strides = [1, 1]} : vector<2x128xf32> to vector<2x32xf32>
    %121 = vector.extract_strided_slice %118 {offsets = [0, 32], sizes = [2, 32], strides = [1, 1]} : vector<2x128xf32> to vector<2x32xf32>
    %122 = vector.extract_strided_slice %119 {offsets = [0, 64], sizes = [2, 32], strides = [1, 1]} : vector<2x128xf32> to vector<2x32xf32>
    %123 = vector.extract_strided_slice %118 {offsets = [0, 96], sizes = [2, 32], strides = [1, 1]} : vector<2x128xf32> to vector<2x32xf32>
    %124 = arith.mulf %121, %89 : vector<2x32xf32>
    %125 = arith.mulf %120, %122 : vector<2x32xf32>
    %126 = arith.addf %124, %125 : vector<2x32xf32>
    %127 = math.tanh %126 : vector<2x32xf32>
    %128 = arith.mulf %123, %127 : vector<2x32xf32>
    %129 = vector.extract_strided_slice %13 {offsets = [0, 3, 0], sizes = [2, 1, 128], strides = [1, 1, 1]} : vector<2x8x128xf32> to vector<2x1x128xf32>
    %130 = vector.shape_cast %129 : vector<2x1x128xf32> to vector<2x128xf32>
    %cst_24 = arith.constant dense<0.000000e+00> : vector<2x128xf32>
    %131 = tpu.matmul %110, %1, %cst_24 {dimension_numbers = #tpu.dot_dimension_numbers<[1], [0], [0], [1], [0, 0, 1, 1], [], []>} : vector<2x32xf32>, vector<32x128xf32>, vector<2x128xf32> -> vector<2x128xf32>
    %132 = arith.addf %130, %131 : vector<2x128xf32>
    %133 = arith.negf %132 : vector<2x128xf32>
    %134 = math.exp %133 : vector<2x128xf32>
    %cst_25 = arith.constant 1.000000e+00 : f32
    %135 = vector.broadcast %cst_25 : f32 to vector<2x128xf32>
    %136 = arith.addf %135, %134 : vector<2x128xf32>
    %137 = arith.divf %135, %136 : vector<2x128xf32>
    %138 = math.tanh %132 : vector<2x128xf32>
    %139 = vector.extract_strided_slice %137 {offsets = [0, 0], sizes = [2, 32], strides = [1, 1]} : vector<2x128xf32> to vector<2x32xf32>
    %140 = vector.extract_strided_slice %137 {offsets = [0, 32], sizes = [2, 32], strides = [1, 1]} : vector<2x128xf32> to vector<2x32xf32>
    %141 = vector.extract_strided_slice %138 {offsets = [0, 64], sizes = [2, 32], strides = [1, 1]} : vector<2x128xf32> to vector<2x32xf32>
    %142 = vector.extract_strided_slice %137 {offsets = [0, 96], sizes = [2, 32], strides = [1, 1]} : vector<2x128xf32> to vector<2x32xf32>
    %143 = arith.mulf %140, %108 : vector<2x32xf32>
    %144 = arith.mulf %139, %141 : vector<2x32xf32>
    %145 = arith.addf %143, %144 : vector<2x32xf32>
    %146 = math.tanh %145 : vector<2x32xf32>
    %147 = arith.mulf %142, %146 : vector<2x32xf32>
    %148 = tpu.concatenate %147, %128 in 1 : vector<2x32xf32>, vector<2x32xf32> -> vector<2x64xf32>
    %cst_26 = arith.constant dense<0.000000e+00> : vector<2x128xf32>
    %149 = tpu.matmul %148, %3, %cst_26 {dimension_numbers = #tpu.dot_dimension_numbers<[1], [0], [0], [1], [0, 0, 1, 1], [], []>} : vector<2x64xf32>, vector<64x128xf32>, vector<2x128xf32> -> vector<2x128xf32>
    %150 = arith.addf %149, %6 : vector<2x128xf32>
    %151 = arith.negf %150 : vector<2x128xf32>
    %152 = math.exp %151 : vector<2x128xf32>
    %cst_27 = arith.constant 1.000000e+00 : f32
    %153 = vector.broadcast %cst_27 : f32 to vector<2x128xf32>
    %154 = arith.addf %153, %152 : vector<2x128xf32>
    %155 = arith.divf %153, %154 : vector<2x128xf32>
    %156 = math.tanh %150 : vector<2x128xf32>
    %157 = vector.extract_strided_slice %155 {offsets = [0, 0], sizes = [2, 32], strides = [1, 1]} : vector<2x128xf32> to vector<2x32xf32>
    %158 = vector.extract_strided_slice %155 {offsets = [0, 32], sizes = [2, 32], strides = [1, 1]} : vector<2x128xf32> to vector<2x32xf32>
    %159 = vector.extract_strided_slice %156 {offsets = [0, 64], sizes = [2, 32], strides = [1, 1]} : vector<2x128xf32> to vector<2x32xf32>
    %160 = vector.extract_strided_slice %155 {offsets = [0, 96], sizes = [2, 32], strides = [1, 1]} : vector<2x128xf32> to vector<2x32xf32>
    %161 = arith.mulf %158, %126 : vector<2x32xf32>
    %162 = arith.mulf %157, %159 : vector<2x32xf32>
    %163 = arith.addf %161, %162 : vector<2x32xf32>
    %164 = math.tanh %163 : vector<2x32xf32>
    %165 = arith.mulf %160, %164 : vector<2x32xf32>
    %166 = vector.extract_strided_slice %13 {offsets = [0, 4, 0], sizes = [2, 1, 128], strides = [1, 1, 1]} : vector<2x8x128xf32> to vector<2x1x128xf32>
    %167 = vector.shape_cast %166 : vector<2x1x128xf32> to vector<2x128xf32>
    %cst_28 = arith.constant dense<0.000000e+00> : vector<2x128xf32>
    %168 = tpu.matmul %147, %1, %cst_28 {dimension_numbers = #tpu.dot_dimension_numbers<[1], [0], [0], [1], [0, 0, 1, 1], [], []>} : vector<2x32xf32>, vector<32x128xf32>, vector<2x128xf32> -> vector<2x128xf32>
    %169 = arith.addf %167, %168 : vector<2x128xf32>
    %170 = arith.negf %169 : vector<2x128xf32>
    %171 = math.exp %170 : vector<2x128xf32>
    %cst_29 = arith.constant 1.000000e+00 : f32
    %172 = vector.broadcast %cst_29 : f32 to vector<2x128xf32>
    %173 = arith.addf %172, %171 : vector<2x128xf32>
    %174 = arith.divf %172, %173 : vector<2x128xf32>
    %175 = math.tanh %169 : vector<2x128xf32>
    %176 = vector.extract_strided_slice %174 {offsets = [0, 0], sizes = [2, 32], strides = [1, 1]} : vector<2x128xf32> to vector<2x32xf32>
    %177 = vector.extract_strided_slice %174 {offsets = [0, 32], sizes = [2, 32], strides = [1, 1]} : vector<2x128xf32> to vector<2x32xf32>
    %178 = vector.extract_strided_slice %175 {offsets = [0, 64], sizes = [2, 32], strides = [1, 1]} : vector<2x128xf32> to vector<2x32xf32>
    %179 = vector.extract_strided_slice %174 {offsets = [0, 96], sizes = [2, 32], strides = [1, 1]} : vector<2x128xf32> to vector<2x32xf32>
    %180 = arith.mulf %177, %145 : vector<2x32xf32>
    %181 = arith.mulf %176, %178 : vector<2x32xf32>
    %182 = arith.addf %180, %181 : vector<2x32xf32>
    %183 = math.tanh %182 : vector<2x32xf32>
    %184 = arith.mulf %179, %183 : vector<2x32xf32>
    %185 = tpu.concatenate %184, %165 in 1 : vector<2x32xf32>, vector<2x32xf32> -> vector<2x64xf32>
    %cst_30 = arith.constant dense<0.000000e+00> : vector<2x128xf32>
    %186 = tpu.matmul %185, %3, %cst_30 {dimension_numbers = #tpu.dot_dimension_numbers<[1], [0], [0], [1], [0, 0, 1, 1], [], []>} : vector<2x64xf32>, vector<64x128xf32>, vector<2x128xf32> -> vector<2x128xf32>
    %187 = arith.addf %186, %6 : vector<2x128xf32>
    %188 = arith.negf %187 : vector<2x128xf32>
    %189 = math.exp %188 : vector<2x128xf32>
    %cst_31 = arith.constant 1.000000e+00 : f32
    %190 = vector.broadcast %cst_31 : f32 to vector<2x128xf32>
    %191 = arith.addf %190, %189 : vector<2x128xf32>
    %192 = arith.divf %190, %191 : vector<2x128xf32>
    %193 = math.tanh %187 : vector<2x128xf32>
    %194 = vector.extract_strided_slice %192 {offsets = [0, 0], sizes = [2, 32], strides = [1, 1]} : vector<2x128xf32> to vector<2x32xf32>
    %195 = vector.extract_strided_slice %192 {offsets = [0, 32], sizes = [2, 32], strides = [1, 1]} : vector<2x128xf32> to vector<2x32xf32>
    %196 = vector.extract_strided_slice %193 {offsets = [0, 64], sizes = [2, 32], strides = [1, 1]} : vector<2x128xf32> to vector<2x32xf32>
    %197 = vector.extract_strided_slice %192 {offsets = [0, 96], sizes = [2, 32], strides = [1, 1]} : vector<2x128xf32> to vector<2x32xf32>
    %198 = arith.mulf %195, %163 : vector<2x32xf32>
    %199 = arith.mulf %194, %196 : vector<2x32xf32>
    %200 = arith.addf %198, %199 : vector<2x32xf32>
    %201 = math.tanh %200 : vector<2x32xf32>
    %202 = arith.mulf %197, %201 : vector<2x32xf32>
    %203 = vector.extract_strided_slice %13 {offsets = [0, 5, 0], sizes = [2, 1, 128], strides = [1, 1, 1]} : vector<2x8x128xf32> to vector<2x1x128xf32>
    %204 = vector.shape_cast %203 : vector<2x1x128xf32> to vector<2x128xf32>
    %cst_32 = arith.constant dense<0.000000e+00> : vector<2x128xf32>
    %205 = tpu.matmul %184, %1, %cst_32 {dimension_numbers = #tpu.dot_dimension_numbers<[1], [0], [0], [1], [0, 0, 1, 1], [], []>} : vector<2x32xf32>, vector<32x128xf32>, vector<2x128xf32> -> vector<2x128xf32>
    %206 = arith.addf %204, %205 : vector<2x128xf32>
    %207 = arith.negf %206 : vector<2x128xf32>
    %208 = math.exp %207 : vector<2x128xf32>
    %cst_33 = arith.constant 1.000000e+00 : f32
    %209 = vector.broadcast %cst_33 : f32 to vector<2x128xf32>
    %210 = arith.addf %209, %208 : vector<2x128xf32>
    %211 = arith.divf %209, %210 : vector<2x128xf32>
    %212 = math.tanh %206 : vector<2x128xf32>
    %213 = vector.extract_strided_slice %211 {offsets = [0, 0], sizes = [2, 32], strides = [1, 1]} : vector<2x128xf32> to vector<2x32xf32>
    %214 = vector.extract_strided_slice %211 {offsets = [0, 32], sizes = [2, 32], strides = [1, 1]} : vector<2x128xf32> to vector<2x32xf32>
    %215 = vector.extract_strided_slice %212 {offsets = [0, 64], sizes = [2, 32], strides = [1, 1]} : vector<2x128xf32> to vector<2x32xf32>
    %216 = vector.extract_strided_slice %211 {offsets = [0, 96], sizes = [2, 32], strides = [1, 1]} : vector<2x128xf32> to vector<2x32xf32>
    %217 = arith.mulf %214, %182 : vector<2x32xf32>
    %218 = arith.mulf %213, %215 : vector<2x32xf32>
    %219 = arith.addf %217, %218 : vector<2x32xf32>
    %220 = math.tanh %219 : vector<2x32xf32>
    %221 = arith.mulf %216, %220 : vector<2x32xf32>
    %222 = tpu.concatenate %221, %202 in 1 : vector<2x32xf32>, vector<2x32xf32> -> vector<2x64xf32>
    %cst_34 = arith.constant dense<0.000000e+00> : vector<2x128xf32>
    %223 = tpu.matmul %222, %3, %cst_34 {dimension_numbers = #tpu.dot_dimension_numbers<[1], [0], [0], [1], [0, 0, 1, 1], [], []>} : vector<2x64xf32>, vector<64x128xf32>, vector<2x128xf32> -> vector<2x128xf32>
    %224 = arith.addf %223, %6 : vector<2x128xf32>
    %225 = arith.negf %224 : vector<2x128xf32>
    %226 = math.exp %225 : vector<2x128xf32>
    %cst_35 = arith.constant 1.000000e+00 : f32
    %227 = vector.broadcast %cst_35 : f32 to vector<2x128xf32>
    %228 = arith.addf %227, %226 : vector<2x128xf32>
    %229 = arith.divf %227, %228 : vector<2x128xf32>
    %230 = math.tanh %224 : vector<2x128xf32>
    %231 = vector.extract_strided_slice %229 {offsets = [0, 0], sizes = [2, 32], strides = [1, 1]} : vector<2x128xf32> to vector<2x32xf32>
    %232 = vector.extract_strided_slice %229 {offsets = [0, 32], sizes = [2, 32], strides = [1, 1]} : vector<2x128xf32> to vector<2x32xf32>
    %233 = vector.extract_strided_slice %230 {offsets = [0, 64], sizes = [2, 32], strides = [1, 1]} : vector<2x128xf32> to vector<2x32xf32>
    %234 = vector.extract_strided_slice %229 {offsets = [0, 96], sizes = [2, 32], strides = [1, 1]} : vector<2x128xf32> to vector<2x32xf32>
    %235 = arith.mulf %232, %200 : vector<2x32xf32>
    %236 = arith.mulf %231, %233 : vector<2x32xf32>
    %237 = arith.addf %235, %236 : vector<2x32xf32>
    %238 = math.tanh %237 : vector<2x32xf32>
    %239 = arith.mulf %234, %238 : vector<2x32xf32>
    %240 = vector.extract_strided_slice %13 {offsets = [0, 6, 0], sizes = [2, 1, 128], strides = [1, 1, 1]} : vector<2x8x128xf32> to vector<2x1x128xf32>
    %241 = vector.shape_cast %240 : vector<2x1x128xf32> to vector<2x128xf32>
    %cst_36 = arith.constant dense<0.000000e+00> : vector<2x128xf32>
    %242 = tpu.matmul %221, %1, %cst_36 {dimension_numbers = #tpu.dot_dimension_numbers<[1], [0], [0], [1], [0, 0, 1, 1], [], []>} : vector<2x32xf32>, vector<32x128xf32>, vector<2x128xf32> -> vector<2x128xf32>
    %243 = arith.addf %241, %242 : vector<2x128xf32>
    %244 = arith.negf %243 : vector<2x128xf32>
    %245 = math.exp %244 : vector<2x128xf32>
    %cst_37 = arith.constant 1.000000e+00 : f32
    %246 = vector.broadcast %cst_37 : f32 to vector<2x128xf32>
    %247 = arith.addf %246, %245 : vector<2x128xf32>
    %248 = arith.divf %246, %247 : vector<2x128xf32>
    %249 = math.tanh %243 : vector<2x128xf32>
    %250 = vector.extract_strided_slice %248 {offsets = [0, 0], sizes = [2, 32], strides = [1, 1]} : vector<2x128xf32> to vector<2x32xf32>
    %251 = vector.extract_strided_slice %248 {offsets = [0, 32], sizes = [2, 32], strides = [1, 1]} : vector<2x128xf32> to vector<2x32xf32>
    %252 = vector.extract_strided_slice %249 {offsets = [0, 64], sizes = [2, 32], strides = [1, 1]} : vector<2x128xf32> to vector<2x32xf32>
    %253 = vector.extract_strided_slice %248 {offsets = [0, 96], sizes = [2, 32], strides = [1, 1]} : vector<2x128xf32> to vector<2x32xf32>
    %254 = arith.mulf %251, %219 : vector<2x32xf32>
    %255 = arith.mulf %250, %252 : vector<2x32xf32>
    %256 = arith.addf %254, %255 : vector<2x32xf32>
    %257 = math.tanh %256 : vector<2x32xf32>
    %258 = arith.mulf %253, %257 : vector<2x32xf32>
    %259 = tpu.concatenate %258, %239 in 1 : vector<2x32xf32>, vector<2x32xf32> -> vector<2x64xf32>
    %cst_38 = arith.constant dense<0.000000e+00> : vector<2x128xf32>
    %260 = tpu.matmul %259, %3, %cst_38 {dimension_numbers = #tpu.dot_dimension_numbers<[1], [0], [0], [1], [0, 0, 1, 1], [], []>} : vector<2x64xf32>, vector<64x128xf32>, vector<2x128xf32> -> vector<2x128xf32>
    %261 = arith.addf %260, %6 : vector<2x128xf32>
    %262 = arith.negf %261 : vector<2x128xf32>
    %263 = math.exp %262 : vector<2x128xf32>
    %cst_39 = arith.constant 1.000000e+00 : f32
    %264 = vector.broadcast %cst_39 : f32 to vector<2x128xf32>
    %265 = arith.addf %264, %263 : vector<2x128xf32>
    %266 = arith.divf %264, %265 : vector<2x128xf32>
    %267 = math.tanh %261 : vector<2x128xf32>
    %268 = vector.extract_strided_slice %266 {offsets = [0, 0], sizes = [2, 32], strides = [1, 1]} : vector<2x128xf32> to vector<2x32xf32>
    %269 = vector.extract_strided_slice %266 {offsets = [0, 32], sizes = [2, 32], strides = [1, 1]} : vector<2x128xf32> to vector<2x32xf32>
    %270 = vector.extract_strided_slice %267 {offsets = [0, 64], sizes = [2, 32], strides = [1, 1]} : vector<2x128xf32> to vector<2x32xf32>
    %271 = vector.extract_strided_slice %266 {offsets = [0, 96], sizes = [2, 32], strides = [1, 1]} : vector<2x128xf32> to vector<2x32xf32>
    %272 = arith.mulf %269, %237 : vector<2x32xf32>
    %273 = arith.mulf %268, %270 : vector<2x32xf32>
    %274 = arith.addf %272, %273 : vector<2x32xf32>
    %275 = math.tanh %274 : vector<2x32xf32>
    %276 = arith.mulf %271, %275 : vector<2x32xf32>
    %277 = vector.extract_strided_slice %13 {offsets = [0, 7, 0], sizes = [2, 1, 128], strides = [1, 1, 1]} : vector<2x8x128xf32> to vector<2x1x128xf32>
    %278 = vector.shape_cast %277 : vector<2x1x128xf32> to vector<2x128xf32>
    %cst_40 = arith.constant dense<0.000000e+00> : vector<2x128xf32>
    %279 = tpu.matmul %258, %1, %cst_40 {dimension_numbers = #tpu.dot_dimension_numbers<[1], [0], [0], [1], [0, 0, 1, 1], [], []>} : vector<2x32xf32>, vector<32x128xf32>, vector<2x128xf32> -> vector<2x128xf32>
    %280 = arith.addf %278, %279 : vector<2x128xf32>
    %281 = arith.negf %280 : vector<2x128xf32>
    %282 = math.exp %281 : vector<2x128xf32>
    %cst_41 = arith.constant 1.000000e+00 : f32
    %283 = vector.broadcast %cst_41 : f32 to vector<2x128xf32>
    %284 = arith.addf %283, %282 : vector<2x128xf32>
    %285 = arith.divf %283, %284 : vector<2x128xf32>
    %286 = math.tanh %280 : vector<2x128xf32>
    %287 = vector.extract_strided_slice %285 {offsets = [0, 0], sizes = [2, 32], strides = [1, 1]} : vector<2x128xf32> to vector<2x32xf32>
    %288 = vector.extract_strided_slice %285 {offsets = [0, 32], sizes = [2, 32], strides = [1, 1]} : vector<2x128xf32> to vector<2x32xf32>
    %289 = vector.extract_strided_slice %286 {offsets = [0, 64], sizes = [2, 32], strides = [1, 1]} : vector<2x128xf32> to vector<2x32xf32>
    %290 = vector.extract_strided_slice %285 {offsets = [0, 96], sizes = [2, 32], strides = [1, 1]} : vector<2x128xf32> to vector<2x32xf32>
    %291 = arith.mulf %288, %256 : vector<2x32xf32>
    %292 = arith.mulf %287, %289 : vector<2x32xf32>
    %293 = arith.addf %291, %292 : vector<2x32xf32>
    %294 = math.tanh %293 : vector<2x32xf32>
    %295 = arith.mulf %290, %294 : vector<2x32xf32>
    %296 = tpu.concatenate %295, %276 in 1 : vector<2x32xf32>, vector<2x32xf32> -> vector<2x64xf32>
    %cst_42 = arith.constant dense<0.000000e+00> : vector<2x128xf32>
    %297 = tpu.matmul %296, %3, %cst_42 {dimension_numbers = #tpu.dot_dimension_numbers<[1], [0], [0], [1], [0, 0, 1, 1], [], []>} : vector<2x64xf32>, vector<64x128xf32>, vector<2x128xf32> -> vector<2x128xf32>
    %298 = arith.addf %297, %6 : vector<2x128xf32>
    %299 = arith.negf %298 : vector<2x128xf32>
    %300 = math.exp %299 : vector<2x128xf32>
    %cst_43 = arith.constant 1.000000e+00 : f32
    %301 = vector.broadcast %cst_43 : f32 to vector<2x128xf32>
    %302 = arith.addf %301, %300 : vector<2x128xf32>
    %303 = arith.divf %301, %302 : vector<2x128xf32>
    %304 = math.tanh %298 : vector<2x128xf32>
    %305 = vector.extract_strided_slice %303 {offsets = [0, 0], sizes = [2, 32], strides = [1, 1]} : vector<2x128xf32> to vector<2x32xf32>
    %306 = vector.extract_strided_slice %303 {offsets = [0, 32], sizes = [2, 32], strides = [1, 1]} : vector<2x128xf32> to vector<2x32xf32>
    %307 = vector.extract_strided_slice %304 {offsets = [0, 64], sizes = [2, 32], strides = [1, 1]} : vector<2x128xf32> to vector<2x32xf32>
    %308 = vector.extract_strided_slice %303 {offsets = [0, 96], sizes = [2, 32], strides = [1, 1]} : vector<2x128xf32> to vector<2x32xf32>
    %309 = arith.mulf %306, %274 : vector<2x32xf32>
    %310 = arith.mulf %305, %307 : vector<2x32xf32>
    %311 = arith.addf %309, %310 : vector<2x32xf32>
    %312 = math.tanh %311 : vector<2x32xf32>
    %313 = arith.mulf %308, %312 : vector<2x32xf32>
    %c120 = arith.constant 120 : index
    %c0_44 = arith.constant 0 : index
    %314 = vector.load %arg1[%c120, %c0_44] : memref<136x128xf32, #tpu.memory_space<vmem>>, vector<1x32xf32>
    %c128 = arith.constant 128 : index
    %c0_45 = arith.constant 0 : index
    %315 = vector.load %arg1[%c128, %c0_45] : memref<136x128xf32, #tpu.memory_space<vmem>>, vector<1x1xf32>
    %316 = vector.broadcast %314 : vector<1x32xf32> to vector<2x32xf32>
    %317 = arith.mulf %313, %316 : vector<2x32xf32>
    %cst_46 = arith.constant dense<0.000000e+00> : vector<2xf32>
    %318 = vector.multi_reduction <add>, %317, %cst_46 [1] : vector<2x32xf32> to vector<2xf32>
    %319 = vector.shape_cast %318 : vector<2xf32> to vector<2x1xf32>
    %320 = vector.broadcast %315 : vector<1x1xf32> to vector<2x1xf32>
    %321 = arith.addf %319, %320 : vector<2x1xf32>
    %c0_47 = arith.constant 0 : index
    %c0_48 = arith.constant 0 : index
    %322 = vector.load %arg2[%c0_47, %c0_48] : memref<2x1xf32, #tpu.memory_space<vmem>>, vector<2x1xf32>
    tpu.vector_store %arg2[%c0_47, %c0_48], %321 {strides = array<i32>} : memref<2x1xf32, #tpu.memory_space<vmem>>, vector<2x1xf32>,
    return
  }
}

</mosaic_0001>

<bundles_post_ra>
// kernel: forward.1
= control target key start
LH: loop header
LB: loop body
LE: loop exit
PB: predicated region body
PF: predicated region fallthrough
CT: control target
= control target key end

     0   :  { %7 = vsyncpa [#allocation3], 0  ;;  %s1877_s12 = smov [#allocation2]   ;;  %s1878_s14 = smov 128   ;;  %s2272_s0 = inlined_call_operand.vmem [shape: f32[2,8,4], index: 0, kind: input, shape index: {}]   ;;  %s2273_s1 = inlined_call_operand.hbm [shape: f32[136,128], index: 1, kind: input, shape index: {}]   ;;  %s2274_s2 = inlined_call_operand.vmem [shape: f32[2,1], index: 2, kind: output, shape index: {}]  }
   0x1   :  { %s14_s11 = sshll.u32 %s2273_s1, 4  ;;  %s16_s13 = sshll.u32 %s1877_s12, 4  ;;  %s15_s11 = int_to_ptr.hbm [resolvable:$true] %s14_s11  ;;  %s17_s13 = int_to_ptr.vmem [resolvable:$true] %s16_s13 }
   0x2   :  { %s1879_s15 = smov 8  }
   0x3   :  { %22 = dma.hbm_to_vmem [thread:$0]  %s15_s11, 2176, %s17_s13, [#allocation3], %s1878_s14, %s1878_s14, %s1879_s15  }
   0x4   :  { %1875 = dma.done.wait [#allocation3], 2176  }
   0x5   :  { %1876 = vsyncadd [#allocation3], 4294965120  ;;  %vm53_vm0 = vcmask 1043456   ;;  %vm46_vm1 = vcmask 31744   ;;  %v27_v0 = vld [vmem:[#allocation2] sm:$0xf] }
   0x6   :  { %v1902_v1 = vld [vmem:[#allocation2 + $0x20] sm:$0xff]  ;;  %1601 = vmatpush.msk.msra.mxu0 %vm53_vm0, %v27_v0  ;;  %v1908_v3 = vld [vmem:[#allocation2 + $0x18] sm:$0xff]  ;;  %v1911_v4 = vld [vmem:[#allocation2 + $0x10] sm:$0xff]  ;;  %v1880_v7 = vmov 0.0   ;;  %s1882_s19 = smov 32   ;;  %vm187_vm10 = vcmask 1041409  }
   0x7   :  { %v43_v2 = vld [vmem:[%s2272_s0] sm:$0xff]  ;;  %96 = vmatpush.msra.mxu1 %v1902_v1  ;;  %268 = vmatpush.msra.mxu3 %v1902_v1  ;;  %v1915_v5 = vld [vmem:[#allocation2 + $0x8] sm:$0xff]  ;;  %v1958_v59 = vld [vmem:[#allocation2 + $0x58] sm:$0xff]  ;;  %vm80_vm11 = vcmask 261120   ;;  %vm193_vm12 = vcmask 523264   ;;  %s1883_s20 = smov 96  }
   0x8   :  { %1602 = vmatmul.msk.f32.vlgmr.msra.gmra.mxu0 %vm46_vm1, %v43_v2  ;;  %v44_v6 = vld [vmem:[%s2272_s0 + $0x8] sm:$0xff]  ;;  %s1881_s0 = smov 64   ;;  %v1954_v58 = vld [vmem:[#allocation2 + $0x60] sm:$0xff]  ;;  %v1963_v60 = vld [vmem:[#allocation2 + $0x50] sm:$0xff] }
   0x9   :  { %97 = vmatpush.msra.mxu1 %v1908_v3  ;;  %269 = vmatpush.msra.mxu3 %v1908_v3  ;;  %v1650_v10 = vld [vmem:[#allocation2 + $0x28] ss:$0 sm:$0xff]  ;;  %v1973_v62 = vld [vmem:[#allocation2 + $0x40] sm:$0xff]  ;;  %v1978_v63 = vld [vmem:[#allocation2 + $0x38] sm:$0xff] }
   0xa   :  { %v1952_v57 = vld [vmem:[#allocation2 + $0x68] sm:$0xff] }
   0xb   :  { %98 = vmatpush.msra.mxu1 %v1911_v4  ;;  %270 = vmatpush.msra.mxu3 %v1911_v4  ;;  %v1968_v61 = vld [vmem:[#allocation2 + $0x48] sm:$0xff] }
   0xc   :  { %205 = vmatpush.msra.mxu2 %v1952_v57  ;;  %388 = vmatpush.msrb.mxu0 %v1952_v57 }
   0xd   :  { %99 = vmatpush.msra.mxu1 %v1915_v5  ;;  %271 = vmatpush.msra.mxu3 %v1915_v5 }
   0xe   :  { %100 = vmatmul.f32.vlgmr.msra.gmra.mxu1 %v1880_v7  ;;  %206 = vmatpush.msra.mxu2 %v1954_v58 }
   0xf   :  { %455 = vmatpush.msrb.mxu1 %v1902_v1  ;;  %576 = vmatpush.msrb.mxu3 %v1952_v57 }
  0x10   :  { %1603 = vmatmul.msk.f32.gmra.mxu0 %vm46_vm1, %v44_v6  ;;  %207 = vmatpush.msra.mxu2 %v1958_v59 }
  0x11   :  { %456 = vmatpush.msrb.mxu1 %v1908_v3  ;;  %389 = vmatpush.msrb.mxu0 %v1954_v58 }
  0x12   :  { %577 = vmatpush.msrb.mxu3 %v1954_v58  ;;  %208 = vmatpush.msra.mxu2 %v1963_v60 }
  0x13   :  { %457 = vmatpush.msrb.mxu1 %v1911_v4  ;;  %390 = vmatpush.msrb.mxu0 %v1958_v59 }
  0x14   :  { %578 = vmatpush.msrb.mxu3 %v1958_v59  ;;  %209 = vmatpush.msra.mxu2 %v1968_v61 }
  0x15   :  { %458 = vmatpush.msrb.mxu1 %v1915_v5  ;;  %391 = vmatpush.msrb.mxu0 %v1963_v60 }
  0x16   :  { %579 = vmatpush.msrb.mxu3 %v1963_v60  ;;  %210 = vmatpush.msra.mxu2 %v1973_v62 }
  0x17   :  { %644 = vmatpush.msra.mxu1 %v1902_v1  ;;  %392 = vmatpush.msrb.mxu0 %v1968_v61 }
  0x18   :  { %580 = vmatpush.msrb.mxu3 %v1968_v61  ;;  %211 = vmatpush.msra.mxu2 %v1978_v63 }
  0x19   :  { %645 = vmatpush.msra.mxu1 %v1908_v3  ;;  %393 = vmatpush.msrb.mxu0 %v1973_v62 }
  0x1a   :  { %581 = vmatpush.msrb.mxu3 %v1973_v62 }
  0x1b   :  { %646 = vmatpush.msra.mxu1 %v1911_v4  ;;  %394 = vmatpush.msrb.mxu0 %v1978_v63 }
  0x1c   :  { %582 = vmatpush.msrb.mxu3 %v1978_v63 }
  0x1d   :  { %647 = vmatpush.msra.mxu1 %v1915_v5 }
  0x85   :  { %v74_v8 = vpop.f32.mrf.mxu0 }
  0x86   :  { %v1937_v15 = vadd.f32 %v1650_v10, %v74_v8 }
  0x8b   :  { %v101_v9 = vpop.f32.mrf.mxu1 }
  0x8c   :  { %v105_v11 = vrot.slane %v101_v9, 1  ;;  %v108_v16 = vadd.f32 %v101_v9, %v1937_v15 }
  0x8d   :  { %v77_v12 = vpop.f32.mrf.mxu0 }
  0x8e   :  { %v1934_v13 = vadd.f32 %v1650_v10, %v77_v12  ;;  %v1604_v20 = vmul.f32 -1.442695, %v108_v16  ;;  %v1989_v10 = vld [vmem:[#allocation2 + $0x30] sm:$0xff] }
  0x8f   :  { %212 = vmatpush.msra.mxu2 %v1989_v10  ;;  %395 = vmatpush.msrb.mxu0 %v1989_v10 }
  0x90   :  { %v109_v14 = vadd.f32 %v105_v11, %v1934_v13  ;;  %583 = vmatpush.msrb.mxu3 %v1989_v10 }
  0x91   :  { %765 = vmatpush.msrb.mxu2 %v1952_v57  ;;  %833 = vmatpush.msra.mxu0 %v1902_v1 }
  0x92   :  { %1654 = vtanh.f32 %v109_v14  ;;  %v1605_v19 = vmul.f32 -1.442695, %v109_v14  ;;  %v2021_v14 = vld [vmem:[#allocation2 + $0x70] ss:$0 sm:$0xff] }
  0x93   :  { %1656 = vtanh.f32 %v108_v16  ;;  %766 = vmatpush.msrb.mxu2 %v1954_v58  ;;  %834 = vmatpush.msra.mxu0 %v1908_v3 }
  0x94   :  { %1658 = vpow2.f32 %v1605_v19 }
  0x95   :  { %1660 = vpow2.f32 %v1604_v20  ;;  %767 = vmatpush.msrb.mxu2 %v1958_v59  ;;  %835 = vmatpush.msra.mxu0 %v1911_v4 }
  0x97   :  { %768 = vmatpush.msrb.mxu2 %v1963_v60  ;;  %836 = vmatpush.msra.mxu0 %v1915_v5 }
  0x98   :  { %v1655_v17 = vpop.eup %1654 }
  0x99   :  { %156 = vrot.lane.b32.xlu0 %v1655_v17, %s1881_s0  ;;  %v1657_v18 = vpop.eup %1656  ;;  %769 = vmatpush.msrb.mxu2 %v1968_v61 }
  0x9a   :  { %v1659_v21 = vpop.eup %1658 }
  0x9b   :  { %v117_v22 = vadd.f32 1.0, %v1659_v21  ;;  %v1661_v23 = vpop.eup %1660  ;;  %770 = vmatpush.msrb.mxu2 %v1973_v62 }
  0x9c   :  { %v116_v24 = vadd.f32 1.0, %v1661_v23 }
  0x9d   :  { %1662 = vrcp.f32 %v117_v22  ;;  %v144_v33 = vand.u32 2147483648, %v117_v22  ;;  %vm138_vm3 = vweird.f32 %v117_v22  ;;  %v142_v34 = vand.u32 2147483647, %v117_v22  ;;  %771 = vmatpush.msrb.mxu2 %v1978_v63 }
  0x9e   :  { %1664 = vrcp.f32 %v116_v24  ;;  %v129_v42 = vand.u32 2147483648, %v116_v24  ;;  %vm123_vm7 = vweird.f32 %v116_v24  ;;  %v127_v43 = vand.u32 2147483647, %v116_v24 }
  0x9f   :  { %v145_v37 = vor.u32 1.1754944e-38, %v144_v33  ;;  %vm143_vm5 = vcmp.eq.f32.partialorder %v142_v34, 8.507059e+37  ;;  %772 = vmatpush.msrb.mxu2 %v1989_v10 }
  0xa0   :  { %v130_v45 = vor.u32 1.1754944e-38, %v129_v42  ;;  %vm128_vm9 = vcmp.eq.f32.partialorder %v127_v43, 8.507059e+37 }
  0xa1   :  { %154 = vrot.lane.b32.xlu0 %v1657_v18, %s1881_s0 }
  0xa3   :  { %v1663_v25 = vpop.eup %1662 }
  0xa4   :  { %v134_v26 = vmul.f32 %v1663_v25, %v117_v22  ;;  %v1665_v28 = vpop.eup %1664  ;;  %vm139_vm2 = vweird.f32 %v1663_v25 }
  0xa5   :  { %v119_v30 = vmul.f32 %v1665_v28, %v116_v24  ;;  %vm140_vm4 = vmor %vm138_vm3, %vm139_vm2  ;;  %vm124_vm6 = vweird.f32 %v1665_v28 }
  0xa6   :  { %v135_v27 = vsub.f32 1.0, %v134_v26  ;;  %vm125_vm8 = vmor %vm123_vm7, %vm124_vm6 }
  0xa7   :  { %v120_v32 = vsub.f32 1.0, %v119_v30 }
  0xa8   :  { %v136_v29 = vmul.f32 %v1663_v25, %v135_v27 }
  0xa9   :  { %v121_v36 = vmul.f32 %v1665_v28, %v120_v32 }
  0xaa   :  { %v137_v31 = vadd.f32 %v1663_v25, %v136_v29 }
  0xab   :  { %v122_v41 = vadd.f32 %v1665_v28, %v121_v36 }
  0xac   :  { %v141_v35 = vsel %vm140_vm4, %v1663_v25, %v137_v31 }
  0xad   :  { %v146_v39 = vsel %vm143_vm5, %v145_v37, %v141_v35  ;;  %v126_v44 = vsel %vm125_vm8, %v1665_v28, %v122_v41 }
  0xae   :  { %v131_v47 = vsel %vm128_vm9, %v130_v45, %v126_v44  ;;  %v151_v49 = vmul.f32 0.0, %v146_v39  ;;  %vm365_vm9 = vcmask 1042434  }
  0xaf   :  { %v150_v52 = vmul.f32 0.0, %v131_v47 }
 0x10b   :  { %v157_v38 = vpop.permute.xlu0 %156 }
 0x10c   :  { %v161_v40 = vmul.f32 %v157_v38, %v146_v39 }
 0x10e   :  { %166 = vrot.lane.b32.xlu1 %v161_v40, %s1882_s19 }
 0x113   :  { %v155_v46 = vpop.permute.xlu0 %154 }
 0x114   :  { %v160_v48 = vmul.f32 %v155_v46, %v131_v47 }
 0x116   :  { %164 = vrot.lane.b32.xlu1 %v160_v48, %s1882_s19 }
 0x180   :  { %v167_v50 = vpop.permute.xlu1 %166 }
 0x181   :  { %v1944_v51 = vadd.f32 %v167_v50, %v151_v49 }
 0x183   :  { %1666 = vtanh.f32 %v1944_v51 }
 0x188   :  { %v165_v53 = vpop.permute.xlu1 %164 }
 0x189   :  { %v1667_v54 = vpop.eup %1666  ;;  %v1947_v55 = vadd.f32 %v165_v53, %v150_v52 }
 0x18a   :  { %178 = vrot.lane.b32.xlu2 %v1667_v54, %s1881_s0 }
 0x18b   :  { %1668 = vtanh.f32 %v1947_v55 }
 0x191   :  { %v1669_v56 = vpop.eup %1668 }
 0x192   :  { %176 = vrot.lane.b32.xlu2 %v1669_v56, %s1881_s0 }
 0x1e4   :  { %v179_v0 = vpop.permute.xlu2 %178 }
 0x1e5   :  { %v183_v2 = vmul.f32 %v179_v0, %v146_v39 }
 0x1e7   :  { %v186_v7 = vrot.slane %v183_v2, 7 }
 0x1ec   :  { %v177_v6 = vpop.permute.xlu2 %176 }
 0x1ed   :  { %v182_v8 = vmul.f32 %v177_v6, %v131_v47 }
 0x1ef   :  { %v188_v9 = vsel %vm187_vm10, %v186_v7, %v182_v8 }
 0x1f0   :  { %189 = vrot.lane.b32.xlu0 %v188_v9, %s1882_s19 }
 0x262   :  { %v190_v11 = vpop.permute.xlu0 %189 }
 0x263   :  { %1608 = vmatmul.msk.f32.vlgmr.msra.gmra.mxu3 %vm80_vm11, %v190_v11  ;;  %v192_v12 = vsel %vm80_vm11, %v190_v11, 0.0 }
 0x264   :  { %1606 = vmatmul.msk.f32.vlgmr.msra.gmra.mxu2 %vm193_vm12, %v192_v12  ;;  %1022 = vmatpush.msra.mxu3 %v1902_v1 }
 0x265   :  { %1527 = vmatpush.msra.mxu2 %v1952_v57 }
 0x266   :  { %1023 = vmatpush.msra.mxu3 %v1908_v3 }
 0x267   :  { %1528 = vmatpush.msra.mxu2 %v1954_v58 }
 0x268   :  { %1024 = vmatpush.msra.mxu3 %v1911_v4 }
 0x269   :  { %1529 = vmatpush.msra.mxu2 %v1958_v59 }
 0x26a   :  { %1025 = vmatpush.msra.mxu3 %v1915_v5 }
 0x26b   :  { %1530 = vmatpush.msra.mxu2 %v1963_v60 }
 0x26d   :  { %1531 = vmatpush.msra.mxu2 %v1968_v61 }
 0x26f   :  { %1532 = vmatpush.msra.mxu2 %v1973_v62 }
 0x271   :  { %1533 = vmatpush.msra.mxu2 %v1978_v63 }
 0x273   :  { %1534 = vmatpush.msra.mxu2 %v1989_v10 }
 0x2e6   :  { %v273_v16 = vpop.f32.mrf.mxu3 }
 0x2e7   :  { %v277_v17 = vrot.slane %v273_v16, 7  ;;  %v281_v18 = vadd.f32 %v273_v16, %v1934_v13  ;;  %v214_v19 = vpop.f32.mrf.mxu2 }
 0x2e8   :  { %v215_v20 = vadd.f32 %v2021_v14, %v214_v19 }
 0x2e9   :  { %v280_v21 = vadd.f32 %v277_v17, %v1937_v15  ;;  %1670 = vtanh.f32 %v281_v18  ;;  %v1610_v25 = vmul.f32 -1.442695, %v281_v18 }
 0x2ea   :  { %1672 = vtanh.f32 %v215_v20  ;;  %v1607_v29 = vmul.f32 -1.442695, %v215_v20 }
 0x2eb   :  { %1674 = vtanh.f32 %v280_v21  ;;  %v1609_v31 = vmul.f32 -1.442695, %v280_v21 }
 0x2ec   :  { %1676 = vpow2.f32 %v1610_v25 }
 0x2ef   :  { %v1671_v22 = vpop.eup %1670 }
 0x2f0   :  { %v1673_v23 = vpop.eup %1672  ;;  %334 = vrot.lane.b32.xlu2 %v1671_v22, %s1881_s0 }
 0x2f1   :  { %239 = vrot.lane.b32.xlu0 %v1673_v23, %s1881_s0  ;;  %v1675_v24 = vpop.eup %1674  ;;  %v325_v23 = vrot.slane %v1944_v51, 7 }
 0x2f2   :  { %332 = vrot.lane.b32.xlu1 %v1675_v24, %s1881_s0  ;;  %v1677_v26 = vpop.eup %1676 }
 0x2f3   :  { %v289_v27 = vadd.f32 1.0, %v1677_v26 }
 0x2f5   :  { %1678 = vrcp.f32 %v289_v27  ;;  %v316_v38 = vand.u32 2147483648, %v289_v27  ;;  %vm310_vm14 = vweird.f32 %v289_v27  ;;  %v314_v40 = vand.u32 2147483647, %v289_v27 }
 0x2f6   :  { %1680 = vpow2.f32 %v1607_v29 }
 0x2f7   :  { %1682 = vpow2.f32 %v1609_v31  ;;  %v317_v42 = vor.u32 1.1754944e-38, %v316_v38  ;;  %vm315_vm0 = vcmp.eq.f32.partialorder %v314_v40, 8.507059e+37 }
 0x2fb   :  { %v1679_v28 = vpop.eup %1678 }
 0x2fc   :  { %v306_v30 = vmul.f32 %v1679_v28, %v289_v27  ;;  %v1681_v34 = vpop.eup %1680  ;;  %vm311_vm13 = vweird.f32 %v1679_v28 }
 0x2fd   :  { %v1683_v35 = vpop.eup %1682  ;;  %v220_v36 = vadd.f32 1.0, %v1681_v34  ;;  %vm312_vm15 = vmor %vm310_vm14, %vm311_vm13 }
 0x2fe   :  { %v307_v32 = vsub.f32 1.0, %v306_v30  ;;  %v288_v39 = vadd.f32 1.0, %v1683_v35 }
 0x2ff   :  { %1684 = vrcp.f32 %v220_v36  ;;  %v232_v0 = vand.u32 2147483648, %v220_v36  ;;  %vm226_vm2 = vweird.f32 %v220_v36  ;;  %v230_v2 = vand.u32 2147483647, %v220_v36 }
 0x300   :  { %v308_v33 = vmul.f32 %v1679_v28, %v307_v32  ;;  %1686 = vrcp.f32 %v288_v39  ;;  %v301_v7 = vand.u32 2147483648, %v288_v39  ;;  %vm295_vm5 = vweird.f32 %v288_v39 }
 0x301   :  { %v299_v9 = vand.u32 2147483647, %v288_v39  ;;  %v233_v11 = vor.u32 1.1754944e-38, %v232_v0  ;;  %vm231_vm7 = vcmp.eq.f32.partialorder %v230_v2, 8.507059e+37 }
 0x302   :  { %v309_v37 = vadd.f32 %v1679_v28, %v308_v33  ;;  %v302_v18 = vor.u32 1.1754944e-38, %v301_v7 }
 0x303   :  { %vm300_vm8 = vcmp.eq.f32.partialorder %v299_v9, 8.507059e+37 }
 0x304   :  { %v313_v41 = vsel %vm312_vm15, %v1679_v28, %v309_v37  ;;  %v324_v28 = vrot.slane %v1947_v55, 7 }
 0x305   :  { %v318_v44 = vsel %vm315_vm0, %v317_v42, %v313_v41  ;;  %v1685_v46 = vpop.eup %1684 }
 0x306   :  { %v1687_v47 = vpop.eup %1686  ;;  %v222_v48 = vmul.f32 %v1685_v46, %v220_v36  ;;  %vm227_vm1 = vweird.f32 %v1685_v46  ;;  %v329_v24 = vmul.f32 %v325_v23, %v318_v44 }
 0x307   :  { %v291_v49 = vmul.f32 %v1687_v47, %v288_v39  ;;  %vm296_vm3 = vweird.f32 %v1687_v47  ;;  %vm228_vm4 = vmor %vm226_vm2, %vm227_vm1 }
 0x308   :  { %v223_v50 = vsub.f32 1.0, %v222_v48  ;;  %vm297_vm6 = vmor %vm295_vm5, %vm296_vm3 }
 0x309   :  { %v292_v52 = vsub.f32 1.0, %v291_v49 }
 0x30a   :  { %v224_v53 = vmul.f32 %v1685_v46, %v223_v50 }
 0x30b   :  { %v293_v54 = vmul.f32 %v1687_v47, %v292_v52 }
 0x30c   :  { %v225_v56 = vadd.f32 %v1685_v46, %v224_v53 }
 0x30d   :  { %v294_v6 = vadd.f32 %v1687_v47, %v293_v54 }
 0x30e   :  { %v229_v8 = vsel %vm228_vm4, %v1685_v46, %v225_v56 }
 0x30f   :  { %v298_v12 = vsel %vm297_vm6, %v1687_v47, %v294_v6  ;;  %v234_v17 = vsel %vm231_vm7, %v233_v11, %v229_v8 }
 0x310   :  { %v303_v21 = vsel %vm300_vm8, %v302_v18, %v298_v12  ;;  %v237_v29 = vmul.f32 0.0, %v234_v17 }
 0x311   :  { %v328_v32 = vmul.f32 %v324_v28, %v303_v21 }
 0x34a   :  { %v335_v43 = vpop.permute.xlu2 %334 }
 0x34b   :  { %v339_v45 = vmul.f32 %v335_v43, %v318_v44 }
 0x34d   :  { %344 = vrot.lane.b32.xlu2 %v339_v45, %s1882_s19 }
 0x363   :  { %v240_v16 = vpop.permute.xlu0 %239 }
 0x364   :  { %v242_v19 = vmul.f32 %v240_v16, %v234_v17  ;;  %v333_v20 = vpop.permute.xlu1 %332 }
 0x365   :  { %v338_v22 = vmul.f32 %v333_v20, %v303_v21 }
 0x366   :  { %244 = vrot.lane.b32.xlu0 %v242_v19, %s1882_s19 }
 0x367   :  { %342 = vrot.lane.b32.xlu1 %v338_v22, %s1882_s19 }
 0x3a7   :  { %v345_v25 = vpop.permute.xlu2 %344 }
 0x3a8   :  { %v2033_v26 = vadd.f32 %v345_v25, %v329_v24 }
 0x3aa   :  { %1688 = vtanh.f32 %v2033_v26 }
 0x3b0   :  { %v1689_v27 = vpop.eup %1688 }
 0x3b1   :  { %356 = vrot.lane.b32.xlu2 %v1689_v27, %s1881_s0 }
 0x3d8   :  { %v245_v30 = vpop.permute.xlu0 %244 }
 0x3d9   :  { %v2038_v31 = vadd.f32 %v245_v30, %v237_v29  ;;  %v343_v33 = vpop.permute.xlu1 %342 }
 0x3da   :  { %v2041_v51 = vadd.f32 %v343_v33, %v328_v32 }
 0x3db   :  { %1690 = vtanh.f32 %v2038_v31 }
 0x3dc   :  { %1692 = vtanh.f32 %v2041_v51 }
 0x3e1   :  { %v1691_v34 = vpop.eup %1690 }
 0x3e2   :  { %250 = vrot.lane.b32.xlu0 %v1691_v34, %s1881_s0  ;;  %v1693_v35 = vpop.eup %1692 }
 0x3e3   :  { %354 = vrot.lane.b32.xlu1 %v1693_v35, %s1881_s0 }
 0x40b   :  { %v357_v36 = vpop.permute.xlu2 %356 }
 0x40c   :  { %v361_v55 = vmul.f32 %v357_v36, %v318_v44 }
 0x40e   :  { %v364_v40 = vrot.slane %v361_v55, 7 }
 0x454   :  { %v251_v37 = vpop.permute.xlu0 %250 }
 0x455   :  { %v253_v38 = vmul.f32 %v251_v37, %v234_v17  ;;  %v355_v39 = vpop.permute.xlu1 %354 }
 0x456   :  { %v360_v42 = vmul.f32 %v355_v39, %v303_v21 }
 0x457   :  { %v371_v41 = vrot.slane %v253_v38, 7 }
 0x458   :  { %v437_v43 = vrot.slane %v360_v42, 1  ;;  %v366_v45 = vsel %vm365_vm9, %v364_v40, %v360_v42  ;;  %vm553_vm9 = vcmask 1043459  }
 0x459   :  { %372 = vrot.lane.b32.xlu2 %v371_v41, %s1881_s0  ;;  %367 = vrot.lane.b32.xlu1 %v366_v45, %s1882_s19 }
 0x45a   :  { %v438_v46 = vsel %vm187_vm10, %v361_v55, %v437_v43 }
 0x45b   :  { %439 = vrot.lane.b32.xlu0 %v438_v46, %s1882_s19 }
 0x4b3   :  { %v373_v47 = vpop.permute.xlu2 %372 }
 0x4cb   :  { %v368_v48 = vpop.permute.xlu1 %367 }
 0x4cc   :  { %v375_v44 = vsel %vm80_vm11, %v368_v48, %v373_v47 }
 0x4cd   :  { %v377_v49 = vrot.slane %v375_v44, 1  ;;  %v440_v50 = vpop.permute.xlu0 %439 }
 0x4ce   :  { %1613 = vmatmul.msk.f32.vlgmr.msrb.gmra.mxu1 %vm80_vm11, %v440_v50 }
 0x4cf   :  { %1611 = vmatmul.msk.f32.vlgmr.msrb.gmra.mxu0 %vm193_vm12, %v377_v49  ;;  %954 = vmatpush.msrb.mxu1 %v1952_v57 }
 0x4d0   :  { %1143 = vmatpush.msrb.mxu0 %v1952_v57 }
 0x4d1   :  { %955 = vmatpush.msrb.mxu1 %v1954_v58 }
 0x4d2   :  { %1144 = vmatpush.msrb.mxu0 %v1954_v58 }
 0x4d3   :  { %956 = vmatpush.msrb.mxu1 %v1958_v59 }
 0x4d4   :  { %1145 = vmatpush.msrb.mxu0 %v1958_v59 }
 0x4d5   :  { %957 = vmatpush.msrb.mxu1 %v1963_v60 }
 0x4d6   :  { %1146 = vmatpush.msrb.mxu0 %v1963_v60 }
 0x4d7   :  { %958 = vmatpush.msrb.mxu1 %v1968_v61 }
 0x4d8   :  { %1147 = vmatpush.msrb.mxu0 %v1968_v61 }
 0x4d9   :  { %959 = vmatpush.msrb.mxu1 %v1973_v62 }
 0x4da   :  { %1148 = vmatpush.msrb.mxu0 %v1973_v62 }
 0x4db   :  { %960 = vmatpush.msrb.mxu1 %v1978_v63 }
 0x4dc   :  { %1149 = vmatpush.msrb.mxu0 %v1978_v63 }
 0x4dd   :  { %961 = vmatpush.msrb.mxu1 %v1989_v10 }
 0x4de   :  { %1150 = vmatpush.msrb.mxu0 %v1989_v10 }
 0x54b   :  { %v460_v52 = vpop.f32.mrf.mxu1 }
 0x54c   :  { %v464_v53 = vrot.slane %v460_v52, 6  ;;  %v465_v54 = vrot.slane %v460_v52, 7  ;;  %v397_v56 = vpop.f32.mrf.mxu0 }
 0x54d   :  { %v398_v0 = vadd.f32 %v2021_v14, %v397_v56 }
 0x54e   :  { %v468_v2 = vadd.f32 %v464_v53, %v1937_v15  ;;  %v469_v6 = vadd.f32 %v465_v54, %v1934_v13 }
 0x54f   :  { %1694 = vtanh.f32 %v398_v0  ;;  %v1612_v11 = vmul.f32 -1.442695, %v398_v0 }
 0x550   :  { %1696 = vtanh.f32 %v468_v2  ;;  %v1614_v18 = vmul.f32 -1.442695, %v468_v2  ;;  %v1615_v19 = vmul.f32 -1.442695, %v469_v6 }
 0x551   :  { %1698 = vtanh.f32 %v469_v6 }
 0x552   :  { %1700 = vpow2.f32 %v1612_v11 }
 0x555   :  { %v1695_v7 = vpop.eup %1694 }
 0x556   :  { %v1697_v8 = vpop.eup %1696  ;;  %422 = vrot.lane.b32.xlu2 %v1695_v7, %s1881_s0 }
 0x557   :  { %v1699_v9 = vpop.eup %1698  ;;  %520 = vrot.lane.b32.xlu0 %v1697_v8, %s1881_s0 }
 0x558   :  { %522 = vrot.lane.b32.xlu1 %v1699_v9, %s1881_s0  ;;  %v1701_v12 = vpop.eup %1700 }
 0x559   :  { %v403_v16 = vadd.f32 1.0, %v1701_v12 }
 0x55b   :  { %1702 = vrcp.f32 %v403_v16  ;;  %v415_v29 = vand.u32 2147483648, %v403_v16  ;;  %vm409_vm14 = vweird.f32 %v403_v16  ;;  %v413_v30 = vand.u32 2147483647, %v403_v16 }
 0x55c   :  { %1704 = vpow2.f32 %v1614_v18  ;;  %v513_v18 = vrot.slane %v2033_v26, 7 }
 0x55d   :  { %1706 = vpow2.f32 %v1615_v19  ;;  %v416_v33 = vor.u32 1.1754944e-38, %v415_v29  ;;  %vm414_vm0 = vcmp.eq.f32.partialorder %v413_v30, 8.507059e+37 }
 0x561   :  { %v1703_v17 = vpop.eup %1702 }
 0x562   :  { %v405_v20 = vmul.f32 %v1703_v17, %v403_v16  ;;  %v1705_v23 = vpop.eup %1704  ;;  %vm410_vm13 = vweird.f32 %v1703_v17 }
 0x563   :  { %v1707_v24 = vpop.eup %1706  ;;  %v476_v25 = vadd.f32 1.0, %v1705_v23  ;;  %vm411_vm15 = vmor %vm409_vm14, %vm410_vm13 }
 0x564   :  { %v406_v21 = vsub.f32 1.0, %v405_v20  ;;  %v477_v28 = vadd.f32 1.0, %v1707_v24 }
 0x565   :  { %1708 = vrcp.f32 %v476_v25  ;;  %v489_v47 = vand.u32 2147483648, %v476_v25  ;;  %vm483_vm3 = vweird.f32 %v476_v25  ;;  %v487_v44 = vand.u32 2147483647, %v476_v25 }
 0x566   :  { %v407_v22 = vmul.f32 %v1703_v17, %v406_v21  ;;  %1710 = vrcp.f32 %v477_v28  ;;  %v504_v48 = vand.u32 2147483648, %v477_v28  ;;  %vm498_vm4 = vweird.f32 %v477_v28 }
 0x567   :  { %v502_v49 = vand.u32 2147483647, %v477_v28  ;;  %v490_v53 = vor.u32 1.1754944e-38, %v489_v47  ;;  %vm488_vm7 = vcmp.eq.f32.partialorder %v487_v44, 8.507059e+37 }
 0x568   :  { %v408_v27 = vadd.f32 %v1703_v17, %v407_v22  ;;  %v505_v54 = vor.u32 1.1754944e-38, %v504_v48 }
 0x569   :  { %vm503_vm8 = vcmp.eq.f32.partialorder %v502_v49, 8.507059e+37 }
 0x56a   :  { %v412_v32 = vsel %vm411_vm15, %v1703_v17, %v408_v27  ;;  %v512_v17 = vrot.slane %v2041_v51, 7 }
 0x56b   :  { %v417_v35 = vsel %vm414_vm0, %v416_v33, %v412_v32  ;;  %v1709_v55 = vpop.eup %1708 }
 0x56c   :  { %v1711_v37 = vpop.eup %1710  ;;  %v479_v38 = vmul.f32 %v1709_v55, %v476_v25  ;;  %vm484_vm1 = vweird.f32 %v1709_v55  ;;  %v420_v9 = vmul.f32 %v417_v35, %v2038_v31 }
 0x56d   :  { %v494_v39 = vmul.f32 %v1711_v37, %v477_v28  ;;  %vm499_vm2 = vweird.f32 %v1711_v37  ;;  %vm485_vm5 = vmor %vm483_vm3, %vm484_vm1 }
 0x56e   :  { %v480_v40 = vsub.f32 1.0, %v479_v38  ;;  %vm500_vm6 = vmor %vm498_vm4, %vm499_vm2 }
 0x56f   :  { %v495_v41 = vsub.f32 1.0, %v494_v39 }
 0x570   :  { %v481_v42 = vmul.f32 %v1709_v55, %v480_v40 }
 0x571   :  { %v496_v43 = vmul.f32 %v1711_v37, %v495_v41 }
 0x572   :  { %v482_v45 = vadd.f32 %v1709_v55, %v481_v42 }
 0x573   :  { %v497_v46 = vadd.f32 %v1711_v37, %v496_v43 }
 0x574   :  { %v486_v50 = vsel %vm485_vm5, %v1709_v55, %v482_v45 }
 0x575   :  { %v501_v52 = vsel %vm500_vm6, %v1711_v37, %v497_v46  ;;  %v491_v0 = vsel %vm488_vm7, %v490_v53, %v486_v50 }
 0x576   :  { %v506_v6 = vsel %vm503_vm8, %v505_v54, %v501_v52  ;;  %v516_v19 = vmul.f32 %v512_v17, %v491_v0 }
 0x577   :  { %v517_v20 = vmul.f32 %v513_v18, %v506_v6 }
 0x5b0   :  { %v423_v34 = vpop.permute.xlu2 %422 }
 0x5b1   :  { %v425_v36 = vmul.f32 %v423_v34, %v417_v35 }
 0x5b3   :  { %427 = vrot.lane.b32.xlu2 %v425_v36, %s1882_s19 }
 0x5c9   :  { %v521_v56 = vpop.permute.xlu0 %520 }
 0x5ca   :  { %v523_v2 = vpop.permute.xlu1 %522  ;;  %v526_v7 = vmul.f32 %v521_v56, %v491_v0 }
 0x5cb   :  { %v527_v8 = vmul.f32 %v523_v2, %v506_v6 }
 0x5cc   :  { %530 = vrot.lane.b32.xlu0 %v526_v7, %s1882_s19 }
 0x5cd   :  { %532 = vrot.lane.b32.xlu1 %v527_v8, %s1882_s19 }
 0x60d   :  { %v428_v11 = vpop.permute.xlu2 %427 }
 0x60e   :  { %v2079_v12 = vadd.f32 %v428_v11, %v420_v9 }
 0x610   :  { %1712 = vtanh.f32 %v2079_v12 }
 0x616   :  { %v1713_v16 = vpop.eup %1712 }
 0x617   :  { %433 = vrot.lane.b32.xlu2 %v1713_v16, %s1881_s0 }
 0x63e   :  { %v531_v21 = vpop.permute.xlu0 %530 }
 0x63f   :  { %v533_v22 = vpop.permute.xlu1 %532  ;;  %v2085_v23 = vadd.f32 %v531_v21, %v516_v19 }
 0x640   :  { %v2087_v24 = vadd.f32 %v533_v22, %v517_v20 }
 0x641   :  { %1714 = vtanh.f32 %v2085_v23 }
 0x642   :  { %1716 = vtanh.f32 %v2087_v24 }
 0x647   :  { %v1715_v31 = vpop.eup %1714 }
 0x648   :  { %v1717_v25 = vpop.eup %1716  ;;  %542 = vrot.lane.b32.xlu0 %v1715_v31, %s1881_s0 }
 0x649   :  { %544 = vrot.lane.b32.xlu1 %v1717_v25, %s1881_s0 }
 0x671   :  { %v434_v51 = vpop.permute.xlu2 %433 }
 0x672   :  { %v436_v26 = vmul.f32 %v434_v51, %v417_v35 }
 0x674   :  { %v559_v27 = vrot.slane %v436_v26, 6 }
 0x676   :  { %560 = vrot.lane.b32.xlu2 %v559_v27, %s1881_s0 }
 0x6ba   :  { %v543_v28 = vpop.permute.xlu0 %542 }
 0x6bb   :  { %v545_v29 = vpop.permute.xlu1 %544  ;;  %v548_v30 = vmul.f32 %v543_v28, %v491_v0 }
 0x6bc   :  { %v549_v32 = vmul.f32 %v545_v29, %v506_v6 }
 0x6bd   :  { %v625_v33 = vrot.slane %v548_v30, 2 }
 0x6be   :  { %v552_v34 = vrot.slane %v549_v32, 7  ;;  %v626_v36 = vrot.slane %v549_v32, 1 }
 0x6c0   :  { %v627_v55 = vsel %vm187_vm10, %v626_v36, %v625_v33  ;;  %v554_v37 = vsel %vm553_vm9, %v552_v34, %v548_v30  ;;  %vm742_vm9 = vcmask 1044484  }
 0x6c1   :  { %628 = vrot.lane.b32.xlu0 %v627_v55, %s1882_s19  ;;  %555 = vrot.lane.b32.xlu1 %v554_v37, %s1882_s19 }
 0x6d0   :  { %v561_v38 = vpop.permute.xlu2 %560 }
 0x733   :  { %v629_v35 = vpop.permute.xlu0 %628  ;;  %v556_v39 = vpop.permute.xlu1 %555 }
 0x734   :  { %v563_v40 = vsel %vm80_vm11, %v556_v39, %v561_v38  ;;  %1618 = vmatmul.msk.f32.vlgmr.msra.gmra.mxu1 %vm80_vm11, %v629_v35  ;;  %v702_v39 = vrot.slane %v2087_v24, 7 }
 0x735   :  { %v565_v41 = vrot.slane %v563_v40, 2  ;;  %1400 = vmatpush.msra.mxu1 %v1902_v1 }
 0x737   :  { %1616 = vmatmul.msk.f32.vlgmr.msrb.gmra.mxu3 %vm193_vm12, %v565_v41  ;;  %1401 = vmatpush.msra.mxu1 %v1908_v3 }
 0x738   :  { %1332 = vmatpush.msrb.mxu3 %v1952_v57 }
 0x739   :  { %1402 = vmatpush.msra.mxu1 %v1911_v4 }
 0x73a   :  { %1333 = vmatpush.msrb.mxu3 %v1954_v58 }
 0x73b   :  { %1403 = vmatpush.msra.mxu1 %v1915_v5 }
 0x73c   :  { %1334 = vmatpush.msrb.mxu3 %v1958_v59 }
 0x73e   :  { %1335 = vmatpush.msrb.mxu3 %v1963_v60 }
 0x740   :  { %1336 = vmatpush.msrb.mxu3 %v1968_v61 }
 0x742   :  { %1337 = vmatpush.msrb.mxu3 %v1973_v62 }
 0x744   :  { %1338 = vmatpush.msrb.mxu3 %v1978_v63 }
 0x746   :  { %1339 = vmatpush.msrb.mxu3 %v1989_v10 }
 0x7b1   :  { %v649_v1 = vpop.f32.mrf.mxu1 }
 0x7b2   :  { %v653_v3 = vrot.slane %v649_v1, 5  ;;  %v654_v57 = vrot.slane %v649_v1, 6 }
 0x7b4   :  { %v657_v4 = vadd.f32 %v653_v3, %v1937_v15  ;;  %v658_v58 = vadd.f32 %v654_v57, %v1934_v13  ;;  %v701_v57 = vrot.slane %v2085_v23, 7 }
 0x7b6   :  { %1718 = vtanh.f32 %v657_v4  ;;  %v1620_v63 = vmul.f32 -1.442695, %v658_v58  ;;  %v1619_v45 = vmul.f32 -1.442695, %v657_v4 }
 0x7b7   :  { %1720 = vtanh.f32 %v658_v58 }
 0x7ba   :  { %v585_v5 = vpop.f32.mrf.mxu3 }
 0x7bb   :  { %v586_v59 = vadd.f32 %v2021_v14, %v585_v5 }
 0x7bc   :  { %v1719_v60 = vpop.eup %1718 }
 0x7bd   :  { %v1721_v61 = vpop.eup %1720  ;;  %1722 = vtanh.f32 %v586_v59  ;;  %709 = vrot.lane.b32.xlu1 %v1719_v60, %s1881_s0  ;;  %v1617_v47 = vmul.f32 -1.442695, %v586_v59 }
 0x7be   :  { %711 = vrot.lane.b32.xlu2 %v1721_v61, %s1881_s0  ;;  %1724 = vpow2.f32 %v1620_v63 }
 0x7c3   :  { %v1723_v62 = vpop.eup %1722 }
 0x7c4   :  { %610 = vrot.lane.b32.xlu0 %v1723_v62, %s1881_s0  ;;  %v1725_v10 = vpop.eup %1724 }
 0x7c5   :  { %v666_v42 = vadd.f32 1.0, %v1725_v10 }
 0x7c7   :  { %1726 = vrcp.f32 %v666_v42  ;;  %v693_v53 = vand.u32 2147483648, %v666_v42  ;;  %vm687_vm14 = vweird.f32 %v666_v42  ;;  %v691_v56 = vand.u32 2147483647, %v666_v42 }
 0x7c8   :  { %1728 = vpow2.f32 %v1619_v45 }
 0x7c9   :  { %1730 = vpow2.f32 %v1617_v47  ;;  %v694_v6 = vor.u32 1.1754944e-38, %v693_v53  ;;  %vm692_vm0 = vcmp.eq.f32.partialorder %v691_v56, 8.507059e+37 }
 0x7cd   :  { %v1727_v43 = vpop.eup %1726 }
 0x7ce   :  { %v683_v46 = vmul.f32 %v1727_v43, %v666_v42  ;;  %v1729_v44 = vpop.eup %1728  ;;  %vm688_vm13 = vweird.f32 %v1727_v43 }
 0x7cf   :  { %v665_v50 = vadd.f32 1.0, %v1729_v44  ;;  %v1731_v54 = vpop.eup %1730  ;;  %vm689_vm15 = vmor %vm687_vm14, %vm688_vm13 }
 0x7d0   :  { %v684_v48 = vsub.f32 1.0, %v683_v46  ;;  %v591_v2 = vadd.f32 1.0, %v1731_v54 }
 0x7d1   :  { %1732 = vrcp.f32 %v665_v50  ;;  %v678_v31 = vand.u32 2147483648, %v665_v50  ;;  %vm672_vm2 = vweird.f32 %v665_v50  ;;  %v676_v25 = vand.u32 2147483647, %v665_v50 }
 0x7d2   :  { %v685_v49 = vmul.f32 %v1727_v43, %v684_v48  ;;  %1734 = vrcp.f32 %v591_v2  ;;  %v603_v33 = vand.u32 2147483648, %v591_v2  ;;  %vm597_vm6 = vweird.f32 %v591_v2 }
 0x7d3   :  { %v679_v27 = vor.u32 1.1754944e-38, %v678_v31  ;;  %vm677_vm4 = vcmp.eq.f32.partialorder %v676_v25, 8.507059e+37  ;;  %v601_v34 = vand.u32 2147483647, %v591_v2 }
 0x7d4   :  { %v686_v52 = vadd.f32 %v1727_v43, %v685_v49  ;;  %v604_v55 = vor.u32 1.1754944e-38, %v603_v33 }
 0x7d5   :  { %vm602_vm8 = vcmp.eq.f32.partialorder %v601_v34, 8.507059e+37 }
 0x7d6   :  { %v690_v0 = vsel %vm689_vm15, %v1727_v43, %v686_v52 }
 0x7d7   :  { %v695_v8 = vsel %vm692_vm0, %v694_v6, %v690_v0  ;;  %v1733_v9 = vpop.eup %1732  ;;  %v1846_v0 = vld [vmem:[#allocation2 + $0x20] sm:$0xff]  ;;  %v1848_v6 = vld [vmem:[#allocation2 + $0x10] sm:$0xff] }
 0x7d8   :  { %v668_v16 = vmul.f32 %v1733_v9, %v665_v50  ;;  %v1735_v17 = vpop.eup %1734  ;;  %vm673_vm1 = vweird.f32 %v1733_v9  ;;  %v706_v40 = vmul.f32 %v702_v39, %v695_v8 }
 0x7d9   :  { %v593_v19 = vmul.f32 %v1735_v17, %v591_v2  ;;  %vm674_vm3 = vmor %vm672_vm2, %vm673_vm1  ;;  %vm598_vm5 = vweird.f32 %v1735_v17  ;;  %v1847_v2 = vld [vmem:[#allocation2 + $0x18] sm:$0xff] }
 0x7da   :  { %v669_v18 = vsub.f32 1.0, %v668_v16  ;;  %vm599_vm7 = vmor %vm597_vm6, %vm598_vm5 }
 0x7db   :  { %v594_v21 = vsub.f32 1.0, %v593_v19 }
 0x7dc   :  { %v670_v20 = vmul.f32 %v1733_v9, %v669_v18 }
 0x7dd   :  { %v595_v51 = vmul.f32 %v1735_v17, %v594_v21 }
 0x7de   :  { %v671_v22 = vadd.f32 %v1733_v9, %v670_v20 }
 0x7df   :  { %v596_v30 = vadd.f32 %v1735_v17, %v595_v51 }
 0x7e0   :  { %v675_v26 = vsel %vm674_vm3, %v1733_v9, %v671_v22 }
 0x7e1   :  { %v680_v28 = vsel %vm677_vm4, %v679_v27, %v675_v26  ;;  %v600_v36 = vsel %vm599_vm7, %v1735_v17, %v596_v30 }
 0x7e2   :  { %v605_v38 = vsel %vm602_vm8, %v604_v55, %v600_v36  ;;  %v705_v4 = vmul.f32 %v701_v57, %v680_v28 }
 0x7e3   :  { %v608_v59 = vmul.f32 %v605_v38, %v2079_v12 }
 0x818   :  { %v712_v7 = vpop.permute.xlu2 %711 }
 0x819   :  { %v716_v11 = vmul.f32 %v712_v7, %v695_v8  ;;  %v1849_v7 = vld [vmem:[#allocation2 + $0x8] sm:$0xff] }
 0x81b   :  { %721 = vrot.lane.b32.xlu2 %v716_v11, %s1882_s19 }
 0x82f   :  { %v710_v29 = vpop.permute.xlu1 %709 }
 0x830   :  { %v715_v32 = vmul.f32 %v710_v29, %v680_v28 }
 0x832   :  { %719 = vrot.lane.b32.xlu1 %v715_v32, %s1882_s19 }
 0x836   :  { %v611_v37 = vpop.permute.xlu0 %610 }
 0x837   :  { %v613_v35 = vmul.f32 %v611_v37, %v605_v38 }
 0x839   :  { %615 = vrot.lane.b32.xlu0 %v613_v35, %s1882_s19 }
 0x875   :  { %v722_v41 = vpop.permute.xlu2 %721 }
 0x876   :  { %v2122_v1 = vadd.f32 %v722_v41, %v706_v40 }
 0x878   :  { %1736 = vtanh.f32 %v2122_v1 }
 0x87e   :  { %v1737_v3 = vpop.eup %1736 }
 0x87f   :  { %733 = vrot.lane.b32.xlu2 %v1737_v3, %s1881_s0 }
 0x8a4   :  { %v720_v58 = vpop.permute.xlu1 %719 }
 0x8a5   :  { %v2127_v5 = vadd.f32 %v720_v58, %v705_v4 }
 0x8a7   :  { %1738 = vtanh.f32 %v2127_v5 }
 0x8ab   :  { %v616_v24 = vpop.permute.xlu0 %615 }
 0x8ac   :  { %v2131_v60 = vadd.f32 %v616_v24, %v608_v59 }
 0x8ad   :  { %v1739_v61 = vpop.eup %1738 }
 0x8ae   :  { %1740 = vtanh.f32 %v2131_v60  ;;  %731 = vrot.lane.b32.xlu1 %v1739_v61, %s1881_s0 }
 0x8b4   :  { %v1741_v62 = vpop.eup %1740 }
 0x8b5   :  { %621 = vrot.lane.b32.xlu0 %v1741_v62, %s1881_s0 }
 0x8d9   :  { %v734_v23 = vpop.permute.xlu2 %733 }
 0x8da   :  { %v738_v63 = vmul.f32 %v734_v23, %v695_v8 }
 0x8dc   :  { %v741_v42 = vrot.slane %v738_v63, 7  ;;  %v815_v45 = vrot.slane %v738_v63, 2 }
 0x920   :  { %v732_v10 = vpop.permute.xlu1 %731 }
 0x921   :  { %v737_v43 = vmul.f32 %v732_v10, %v680_v28 }
 0x923   :  { %v814_v46 = vrot.slane %v737_v43, 3  ;;  %v743_v12 = vsel %vm742_vm9, %v741_v42, %v737_v43  ;;  %vm931_vm9 = vcmask 1045509  }
 0x924   :  { %744 = vrot.lane.b32.xlu1 %v743_v12, %s1882_s19 }
 0x925   :  { %v816_v47 = vsel %vm187_vm10, %v815_v45, %v814_v46 }
 0x926   :  { %817 = vrot.lane.b32.xlu0 %v816_v47, %s1882_s19 }
 0x927   :  { %v622_v48 = vpop.permute.xlu0 %621 }
 0x928   :  { %v624_v44 = vmul.f32 %v622_v48, %v605_v38 }
 0x92a   :  { %v748_v49 = vrot.slane %v624_v44, 5 }
 0x92c   :  { %749 = vrot.lane.b32.xlu2 %v748_v49, %s1881_s0 }
 0x986   :  { %v750_v50 = vpop.permute.xlu2 %749 }
 0x996   :  { %v745_v52 = vpop.permute.xlu1 %744 }
 0x997   :  { %v752_v53 = vsel %vm80_vm11, %v745_v52, %v750_v50 }
 0x998   :  { %v754_v54 = vrot.slane %v752_v53, 3  ;;  %v818_v56 = vpop.permute.xlu0 %817 }
 0x999   :  { %1623 = vmatmul.msk.f32.vlgmr.msra.gmra.mxu0 %vm80_vm11, %v818_v56 }
 0x99a   :  { %1621 = vmatmul.msk.f32.vlgmr.msrb.gmra.mxu2 %vm193_vm12, %v754_v54  ;;  %1211 = vmatpush.msra.mxu0 %v1846_v0  ;;  %v891_v0 = vrot.slane %v2122_v1, 7 }
 0x99c   :  { %1212 = vmatpush.msra.mxu0 %v1847_v2 }
 0x99e   :  { %1213 = vmatpush.msra.mxu0 %v1848_v6 }
 0x9a0   :  { %1214 = vmatpush.msra.mxu0 %v1849_v7 }
 0xa16   :  { %v838_v8 = vpop.f32.mrf.mxu0 }
 0xa17   :  { %v842_v9 = vrot.slane %v838_v8, 4  ;;  %v843_v11 = vrot.slane %v838_v8, 5 }
 0xa19   :  { %v846_v16 = vadd.f32 %v842_v9, %v1937_v15  ;;  %v847_v17 = vadd.f32 %v843_v11, %v1934_v13  ;;  %v890_v9 = vrot.slane %v2127_v5, 7 }
 0xa1b   :  { %1742 = vtanh.f32 %v846_v16  ;;  %v1625_v31 = vmul.f32 -1.442695, %v847_v17  ;;  %v1624_v27 = vmul.f32 -1.442695, %v846_v16 }
 0xa1c   :  { %1744 = vtanh.f32 %v847_v17 }
 0xa1d   :  { %v774_v18 = vpop.f32.mrf.mxu2 }
 0xa1e   :  { %v775_v19 = vadd.f32 %v2021_v14, %v774_v18 }
 0xa20   :  { %1746 = vtanh.f32 %v775_v19  ;;  %v1622_v14 = vmul.f32 -1.442695, %v775_v19 }
 0xa21   :  { %v1743_v20 = vpop.eup %1742  ;;  %1748 = vpow2.f32 %v1625_v31 }
 0xa22   :  { %v1745_v21 = vpop.eup %1744  ;;  %898 = vrot.lane.b32.xlu1 %v1743_v20, %s1881_s0 }
 0xa23   :  { %900 = vrot.lane.b32.xlu2 %v1745_v21, %s1881_s0 }
 0xa26   :  { %v1747_v22 = vpop.eup %1746 }
 0xa27   :  { %799 = vrot.lane.b32.xlu0 %v1747_v22, %s1881_s0  ;;  %v1749_v25 = vpop.eup %1748 }
 0xa28   :  { %v855_v51 = vadd.f32 1.0, %v1749_v25 }
 0xa2a   :  { %1750 = vrcp.f32 %v855_v51  ;;  %v882_v55 = vand.u32 2147483648, %v855_v51  ;;  %vm876_vm14 = vweird.f32 %v855_v51  ;;  %v880_v37 = vand.u32 2147483647, %v855_v51 }
 0xa2b   :  { %1752 = vpow2.f32 %v1624_v27 }
 0xa2c   :  { %1754 = vpow2.f32 %v1622_v14  ;;  %v883_v39 = vor.u32 1.1754944e-38, %v882_v55  ;;  %vm881_vm0 = vcmp.eq.f32.partialorder %v880_v37, 8.507059e+37 }
 0xa30   :  { %v1751_v26 = vpop.eup %1750 }
 0xa31   :  { %v872_v28 = vmul.f32 %v1751_v26, %v855_v51  ;;  %v1753_v30 = vpop.eup %1752  ;;  %vm877_vm13 = vweird.f32 %v1751_v26 }
 0xa32   :  { %v854_v33 = vadd.f32 1.0, %v1753_v30  ;;  %v1755_v34 = vpop.eup %1754  ;;  %vm878_vm15 = vmor %vm876_vm14, %vm877_vm13 }
 0xa33   :  { %v873_v29 = vsub.f32 1.0, %v872_v28  ;;  %v780_v38 = vadd.f32 1.0, %v1755_v34 }
 0xa34   :  { %1756 = vrcp.f32 %v854_v33  ;;  %v867_v63 = vand.u32 2147483648, %v854_v33  ;;  %vm861_vm2 = vweird.f32 %v854_v33  ;;  %v865_v42 = vand.u32 2147483647, %v854_v33 }
 0xa35   :  { %v874_v32 = vmul.f32 %v1751_v26, %v873_v29  ;;  %1758 = vrcp.f32 %v780_v38  ;;  %v792_v12 = vand.u32 2147483648, %v780_v38  ;;  %vm786_vm6 = vweird.f32 %v780_v38 }
 0xa36   :  { %v868_v45 = vor.u32 1.1754944e-38, %v867_v63  ;;  %vm866_vm5 = vcmp.eq.f32.partialorder %v865_v42, 8.507059e+37  ;;  %v790_v44 = vand.u32 2147483647, %v780_v38 }
 0xa37   :  { %v875_v36 = vadd.f32 %v1751_v26, %v874_v32  ;;  %v793_v52 = vor.u32 1.1754944e-38, %v792_v12 }
 0xa38   :  { %vm791_vm8 = vcmp.eq.f32.partialorder %v790_v44, 8.507059e+37 }
 0xa39   :  { %v879_v35 = vsel %vm878_vm15, %v1751_v26, %v875_v36 }
 0xa3a   :  { %v884_v41 = vsel %vm881_vm0, %v883_v39, %v879_v35  ;;  %v1757_v3 = vpop.eup %1756 }
 0xa3b   :  { %v857_v4 = vmul.f32 %v1757_v3, %v854_v33  ;;  %v1759_v58 = vpop.eup %1758  ;;  %vm862_vm1 = vweird.f32 %v1757_v3  ;;  %v895_v2 = vmul.f32 %v891_v0, %v884_v41 }
 0xa3c   :  { %v782_v24 = vmul.f32 %v1759_v58, %v780_v38  ;;  %vm863_vm3 = vmor %vm861_vm2, %vm862_vm1  ;;  %vm787_vm4 = vweird.f32 %v1759_v58 }
 0xa3d   :  { %v858_v59 = vsub.f32 1.0, %v857_v4  ;;  %vm788_vm7 = vmor %vm786_vm6, %vm787_vm4 }
 0xa3e   :  { %v783_v62 = vsub.f32 1.0, %v782_v24 }
 0xa3f   :  { %v859_v61 = vmul.f32 %v1757_v3, %v858_v59 }
 0xa40   :  { %v784_v10 = vmul.f32 %v1759_v58, %v783_v62 }
 0xa41   :  { %v860_v23 = vadd.f32 %v1757_v3, %v859_v61 }
 0xa42   :  { %v785_v46 = vadd.f32 %v1759_v58, %v784_v10 }
 0xa43   :  { %v864_v43 = vsel %vm863_vm3, %v1757_v3, %v860_v23 }
 0xa44   :  { %v869_v47 = vsel %vm866_vm5, %v868_v45, %v864_v43  ;;  %v789_v50 = vsel %vm788_vm7, %v1759_v58, %v785_v46 }
 0xa45   :  { %v794_v54 = vsel %vm791_vm8, %v793_v52, %v789_v50  ;;  %v894_v11 = vmul.f32 %v890_v9, %v869_v47 }
 0xa46   :  { %v797_v18 = vmul.f32 %v794_v54, %v2131_v60 }
 0xa7d   :  { %v901_v40 = vpop.permute.xlu2 %900 }
 0xa7e   :  { %v905_v57 = vmul.f32 %v901_v40, %v884_v41  ;;  %v2174_v40 = vld [vmem:[#allocation2 + $0x70] ss:$0 sm:$0xff] }
 0xa80   :  { %910 = vrot.lane.b32.xlu2 %v905_v57, %s1882_s19 }
 0xa94   :  { %v899_v48 = vpop.permute.xlu1 %898 }
 0xa95   :  { %v904_v49 = vmul.f32 %v899_v48, %v869_v47 }
 0xa97   :  { %908 = vrot.lane.b32.xlu1 %v904_v49, %s1882_s19 }
 0xa99   :  { %v800_v53 = vpop.permute.xlu0 %799 }
 0xa9a   :  { %v802_v56 = vmul.f32 %v800_v53, %v794_v54 }
 0xa9c   :  { %804 = vrot.lane.b32.xlu0 %v802_v56, %s1882_s19 }
 0xada   :  { %v911_v6 = vpop.permute.xlu2 %910 }
 0xadb   :  { %v2153_v7 = vadd.f32 %v911_v6, %v895_v2 }
 0xadd   :  { %1760 = vtanh.f32 %v2153_v7 }
 0xae3   :  { %v1761_v8 = vpop.eup %1760 }
 0xae4   :  { %922 = vrot.lane.b32.xlu2 %v1761_v8, %s1881_s0 }
 0xb09   :  { %v909_v16 = vpop.permute.xlu1 %908 }
 0xb0a   :  { %v2158_v17 = vadd.f32 %v909_v16, %v894_v11 }
 0xb0c   :  { %1762 = vtanh.f32 %v2158_v17 }
 0xb0e   :  { %v805_v1 = vpop.permute.xlu0 %804 }
 0xb0f   :  { %v2162_v19 = vadd.f32 %v805_v1, %v797_v18 }
 0xb11   :  { %1764 = vtanh.f32 %v2162_v19 }
 0xb12   :  { %v1763_v20 = vpop.eup %1762 }
 0xb13   :  { %920 = vrot.lane.b32.xlu1 %v1763_v20, %s1881_s0 }
 0xb17   :  { %v1765_v21 = vpop.eup %1764 }
 0xb18   :  { %810 = vrot.lane.b32.xlu0 %v1765_v21, %s1881_s0 }
 0xb3e   :  { %v923_v5 = vpop.permute.xlu2 %922 }
 0xb3f   :  { %v927_v22 = vmul.f32 %v923_v5, %v884_v41 }
 0xb41   :  { %v930_v25 = vrot.slane %v927_v22, 7  ;;  %v1004_v26 = vrot.slane %v927_v22, 3 }
 0xb85   :  { %v921_v31 = vpop.permute.xlu1 %920 }
 0xb86   :  { %v926_v51 = vmul.f32 %v921_v31, %v869_v47 }
 0xb88   :  { %v1003_v27 = vrot.slane %v926_v51, 4  ;;  %v932_v60 = vsel %vm931_vm9, %v930_v25, %v926_v51  ;;  %vm1120_vm9 = vcmask 1046534  }
 0xb89   :  { %933 = vrot.lane.b32.xlu2 %v932_v60, %s1882_s19 }
 0xb8a   :  { %v811_v28 = vpop.permute.xlu0 %810  ;;  %v1005_v14 = vsel %vm187_vm10, %v1004_v26, %v1003_v27 }
 0xb8b   :  { %v813_v29 = vmul.f32 %v811_v28, %v794_v54  ;;  %1006 = vrot.lane.b32.xlu1 %v1005_v14, %s1882_s19 }
 0xb8d   :  { %v937_v30 = vrot.slane %v813_v29, 4 }
 0xb8f   :  { %938 = vrot.lane.b32.xlu0 %v937_v30, %s1881_s0 }
 0xbe3   :  { %v934_v33 = vpop.permute.xlu2 %933 }
 0xbfd   :  { %v1007_v32 = vpop.permute.xlu1 %1006 }
 0xbfe   :  { %1628 = vmatmul.msk.f32.vlgmr.msra.gmra.mxu3 %vm80_vm11, %v1007_v32 }
 0xc01   :  { %v939_v34 = vpop.permute.xlu0 %938 }
 0xc02   :  { %v941_v36 = vsel %vm80_vm11, %v934_v33, %v939_v34 }
 0xc03   :  { %v943_v55 = vrot.slane %v941_v36, 4 }
 0xc05   :  { %1626 = vmatmul.msk.f32.vlgmr.msrb.gmra.mxu1 %vm193_vm12, %v943_v55 }
 0xc81   :  { %v1027_v37 = vpop.f32.mrf.mxu3 }
 0xc82   :  { %v1031_v38 = vrot.slane %v1027_v37, 3  ;;  %v1032_v35 = vrot.slane %v1027_v37, 4  ;;  %v963_v39 = vpop.f32.mrf.mxu1 }
 0xc83   :  { %v964_v41 = vadd.f32 %v2174_v40, %v963_v39 }
 0xc84   :  { %v1035_v3 = vadd.f32 %v1031_v38, %v1937_v15  ;;  %v1036_v57 = vadd.f32 %v1032_v35, %v1934_v13  ;;  %v1079_v38 = vrot.slane %v2158_v17, 7  ;;  %v1080_v35 = vrot.slane %v2153_v7, 7 }
 0xc85   :  { %1766 = vtanh.f32 %v964_v41  ;;  %v1627_v24 = vmul.f32 -1.442695, %v964_v41 }
 0xc86   :  { %1768 = vtanh.f32 %v1035_v3  ;;  %v1629_v63 = vmul.f32 -1.442695, %v1035_v3  ;;  %v1630_v10 = vmul.f32 -1.442695, %v1036_v57 }
 0xc87   :  { %1770 = vtanh.f32 %v1036_v57 }
 0xc88   :  { %1772 = vpow2.f32 %v1627_v24 }
 0xc8b   :  { %v1767_v4 = vpop.eup %1766 }
 0xc8c   :  { %v1769_v58 = vpop.eup %1768  ;;  %988 = vrot.lane.b32.xlu2 %v1767_v4, %s1881_s0 }
 0xc8d   :  { %v1771_v59 = vpop.eup %1770  ;;  %1087 = vrot.lane.b32.xlu0 %v1769_v58, %s1881_s0 }
 0xc8e   :  { %1089 = vrot.lane.b32.xlu1 %v1771_v59, %s1881_s0  ;;  %v1773_v61 = vpop.eup %1772 }
 0xc8f   :  { %v969_v62 = vadd.f32 1.0, %v1773_v61 }
 0xc91   :  { %1774 = vrcp.f32 %v969_v62  ;;  %v981_v49 = vand.u32 2147483648, %v969_v62  ;;  %vm975_vm14 = vweird.f32 %v969_v62  ;;  %v979_v50 = vand.u32 2147483647, %v969_v62 }
 0xc92   :  { %1776 = vpow2.f32 %v1629_v63 }
 0xc93   :  { %1778 = vpow2.f32 %v1630_v10  ;;  %v982_v53 = vor.u32 1.1754944e-38, %v981_v49  ;;  %vm980_vm0 = vcmp.eq.f32.partialorder %v979_v50, 8.507059e+37 }
 0xc97   :  { %v1775_v23 = vpop.eup %1774 }
 0xc98   :  { %v971_v42 = vmul.f32 %v1775_v23, %v969_v62  ;;  %v1777_v46 = vpop.eup %1776  ;;  %vm976_vm13 = vweird.f32 %v1775_v23 }
 0xc99   :  { %v1779_v12 = vpop.eup %1778  ;;  %v1043_v47 = vadd.f32 1.0, %v1777_v46  ;;  %vm977_vm15 = vmor %vm975_vm14, %vm976_vm13 }
 0xc9a   :  { %v972_v43 = vsub.f32 1.0, %v971_v42  ;;  %v1044_v44 = vadd.f32 1.0, %v1779_v12 }
 0xc9b   :  { %1780 = vrcp.f32 %v1043_v47  ;;  %v1056_v5 = vand.u32 2147483648, %v1043_v47  ;;  %vm1050_vm3 = vweird.f32 %v1043_v47  ;;  %v1054_v31 = vand.u32 2147483647, %v1043_v47 }
 0xc9c   :  { %v973_v45 = vmul.f32 %v1775_v23, %v972_v43  ;;  %1782 = vrcp.f32 %v1044_v44  ;;  %v1071_v22 = vand.u32 2147483648, %v1044_v44  ;;  %vm1065_vm4 = vweird.f32 %v1044_v44 }
 0xc9d   :  { %v1069_v25 = vand.u32 2147483647, %v1044_v44  ;;  %v1057_v27 = vor.u32 1.1754944e-38, %v1056_v5  ;;  %vm1055_vm7 = vcmp.eq.f32.partialorder %v1054_v31, 8.507059e+37 }
 0xc9e   :  { %v974_v48 = vadd.f32 %v1775_v23, %v973_v45  ;;  %v1072_v60 = vor.u32 1.1754944e-38, %v1071_v22 }
 0xc9f   :  { %vm1070_vm8 = vcmp.eq.f32.partialorder %v1069_v25, 8.507059e+37 }
 0xca0   :  { %v978_v52 = vsel %vm977_vm15, %v1775_v23, %v974_v48 }
 0xca1   :  { %v983_v56 = vsel %vm980_vm0, %v982_v53, %v978_v52  ;;  %v1781_v2 = vpop.eup %1780 }
 0xca2   :  { %v1783_v6 = vpop.eup %1782  ;;  %v1046_v8 = vmul.f32 %v1781_v2, %v1043_v47  ;;  %vm1051_vm1 = vweird.f32 %v1781_v2  ;;  %v986_v34 = vmul.f32 %v983_v56, %v2162_v19 }
 0xca3   :  { %v1061_v9 = vmul.f32 %v1783_v6, %v1044_v44  ;;  %vm1066_vm2 = vweird.f32 %v1783_v6  ;;  %vm1052_vm5 = vmor %vm1050_vm3, %vm1051_vm1 }
 0xca4   :  { %v1047_v11 = vsub.f32 1.0, %v1046_v8  ;;  %vm1067_vm6 = vmor %vm1065_vm4, %vm1066_vm2 }
 0xca5   :  { %v1062_v16 = vsub.f32 1.0, %v1061_v9 }
 0xca6   :  { %v1048_v18 = vmul.f32 %v1781_v2, %v1047_v11 }
 0xca7   :  { %v1063_v1 = vmul.f32 %v1783_v6, %v1062_v16 }
 0xca8   :  { %v1049_v20 = vadd.f32 %v1781_v2, %v1048_v18 }
 0xca9   :  { %v1064_v21 = vadd.f32 %v1783_v6, %v1063_v1 }
 0xcaa   :  { %v1053_v51 = vsel %vm1052_vm5, %v1781_v2, %v1049_v20 }
 0xcab   :  { %v1068_v26 = vsel %vm1067_vm6, %v1783_v6, %v1064_v21  ;;  %v1058_v14 = vsel %vm1055_vm7, %v1057_v27, %v1053_v51 }
 0xcac   :  { %v1073_v30 = vsel %vm1070_vm8, %v1072_v60, %v1068_v26  ;;  %v1083_v39 = vmul.f32 %v1079_v38, %v1058_v14 }
 0xcad   :  { %v1084_v41 = vmul.f32 %v1080_v35, %v1073_v30 }
 0xce6   :  { %v989_v54 = vpop.permute.xlu2 %988 }
 0xce7   :  { %v991_v0 = vmul.f32 %v989_v54, %v983_v56 }
 0xce9   :  { %993 = vrot.lane.b32.xlu2 %v991_v0, %s1882_s19 }
 0xcff   :  { %v1088_v28 = vpop.permute.xlu0 %1087 }
 0xd00   :  { %v1090_v29 = vpop.permute.xlu1 %1089  ;;  %v1093_v32 = vmul.f32 %v1088_v28, %v1058_v14 }
 0xd01   :  { %v1094_v33 = vmul.f32 %v1090_v29, %v1073_v30 }
 0xd02   :  { %1097 = vrot.lane.b32.xlu0 %v1093_v32, %s1882_s19 }
 0xd03   :  { %1099 = vrot.lane.b32.xlu1 %v1094_v33, %s1882_s19 }
 0xd43   :  { %v994_v36 = vpop.permute.xlu2 %993 }
 0xd44   :  { %v2186_v55 = vadd.f32 %v994_v36, %v986_v34 }
 0xd46   :  { %1784 = vtanh.f32 %v2186_v55 }
 0xd4c   :  { %v1785_v37 = vpop.eup %1784 }
 0xd4d   :  { %999 = vrot.lane.b32.xlu2 %v1785_v37, %s1881_s0 }
 0xd74   :  { %v1098_v3 = vpop.permute.xlu0 %1097 }
 0xd75   :  { %v1100_v57 = vpop.permute.xlu1 %1099  ;;  %v2192_v4 = vadd.f32 %v1098_v3, %v1083_v39 }
 0xd76   :  { %v2194_v58 = vadd.f32 %v1100_v57, %v1084_v41 }
 0xd77   :  { %1786 = vtanh.f32 %v2192_v4 }
 0xd78   :  { %1788 = vtanh.f32 %v2194_v58 }
 0xd7d   :  { %v1787_v19 = vpop.eup %1786 }
 0xd7e   :  { %v1789_v59 = vpop.eup %1788  ;;  %1109 = vrot.lane.b32.xlu0 %v1787_v19, %s1881_s0 }
 0xd7f   :  { %1111 = vrot.lane.b32.xlu1 %v1789_v59, %s1881_s0 }
 0xda7   :  { %v1000_v17 = vpop.permute.xlu2 %999 }
 0xda8   :  { %v1002_v7 = vmul.f32 %v1000_v17, %v983_v56 }
 0xdaa   :  { %v1126_v24 = vrot.slane %v1002_v7, 3 }
 0xdac   :  { %1127 = vrot.lane.b32.xlu2 %v1126_v24, %s1881_s0 }
 0xdf0   :  { %v1110_v61 = vpop.permute.xlu0 %1109 }
 0xdf1   :  { %v1112_v62 = vpop.permute.xlu1 %1111  ;;  %v1115_v23 = vmul.f32 %v1110_v61, %v1058_v14 }
 0xdf2   :  { %v1116_v63 = vmul.f32 %v1112_v62, %v1073_v30 }
 0xdf3   :  { %v1192_v10 = vrot.slane %v1115_v23, 5 }
 0xdf4   :  { %v1119_v42 = vrot.slane %v1116_v63, 7  ;;  %v1193_v43 = vrot.slane %v1116_v63, 4 }
 0xdf6   :  { %v1194_v45 = vsel %vm187_vm10, %v1193_v43, %v1192_v10  ;;  %v1121_v46 = vsel %vm1120_vm9, %v1119_v42, %v1115_v23  ;;  %vm1309_vm9 = vcmask 1047559  }
 0xdf7   :  { %1195 = vrot.lane.b32.xlu0 %v1194_v45, %s1882_s19  ;;  %1122 = vrot.lane.b32.xlu1 %v1121_v46, %s1882_s19 }
 0xe06   :  { %v1128_v12 = vpop.permute.xlu2 %1127 }
 0xe69   :  { %v1123_v47 = vpop.permute.xlu1 %1122  ;;  %v1196_v49 = vpop.permute.xlu0 %1195 }
 0xe6a   :  { %v1130_v48 = vsel %vm80_vm11, %v1123_v47, %v1128_v12 }
 0xe6b   :  { %v1132_v44 = vrot.slane %v1130_v48, 5 }
 0xe6d   :  { %1631 = vmatmul.msk.f32.vlgmr.msrb.gmra.mxu0 %vm193_vm12, %v1132_v44 }
 0xe75   :  { %1633 = vmatmul.msk.f32.vlgmr.msra.gmra.mxu0 %vm80_vm11, %v1196_v49 }
 0xeea   :  { %v1152_v50 = vpop.f32.mrf.mxu0 }
 0xeeb   :  { %v1153_v52 = vadd.f32 %v2174_v40, %v1152_v50 }
 0xeed   :  { %1790 = vtanh.f32 %v1153_v52  ;;  %v1632_v11 = vmul.f32 -1.442695, %v1153_v52  ;;  %v1268_v52 = vrot.slane %v2192_v4, 7 }
 0xef2   :  { %v1216_v53 = vpop.f32.mrf.mxu0 }
 0xef3   :  { %v1791_v54 = vpop.eup %1790  ;;  %v1220_v56 = vrot.slane %v1216_v53, 2  ;;  %v1221_v0 = vrot.slane %v1216_v53, 3 }
 0xef4   :  { %1177 = vrot.lane.b32.xlu2 %v1791_v54, %s1881_s0 }
 0xef5   :  { %v1224_v2 = vadd.f32 %v1220_v56, %v1937_v15  ;;  %v1225_v6 = vadd.f32 %v1221_v0, %v1934_v13  ;;  %v1269_v56 = vrot.slane %v2194_v58, 7 }
 0xef7   :  { %1792 = vtanh.f32 %v1224_v2  ;;  %v1634_v5 = vmul.f32 -1.442695, %v1224_v2  ;;  %v1635_v31 = vmul.f32 -1.442695, %v1225_v6 }
 0xef8   :  { %1794 = vtanh.f32 %v1225_v6 }
 0xef9   :  { %1796 = vpow2.f32 %v1632_v11 }
 0xefd   :  { %v1793_v8 = vpop.eup %1792 }
 0xefe   :  { %1276 = vrot.lane.b32.xlu0 %v1793_v8, %s1881_s0  ;;  %v1795_v9 = vpop.eup %1794 }
 0xeff   :  { %1278 = vrot.lane.b32.xlu1 %v1795_v9, %s1881_s0  ;;  %v1797_v16 = vpop.eup %1796 }
 0xf00   :  { %v1158_v18 = vadd.f32 1.0, %v1797_v16 }
 0xf02   :  { %1798 = vrcp.f32 %v1158_v18  ;;  %v1170_v51 = vand.u32 2147483648, %v1158_v18  ;;  %vm1164_vm14 = vweird.f32 %v1158_v18  ;;  %v1168_v26 = vand.u32 2147483647, %v1158_v18 }
 0xf03   :  { %1800 = vpow2.f32 %v1634_v5 }
 0xf04   :  { %1802 = vpow2.f32 %v1635_v31  ;;  %v1171_v60 = vor.u32 1.1754944e-38, %v1170_v51  ;;  %vm1169_vm0 = vcmp.eq.f32.partialorder %v1168_v26, 8.507059e+37 }
 0xf08   :  { %v1799_v1 = vpop.eup %1798 }
 0xf09   :  { %v1160_v20 = vmul.f32 %v1799_v1, %v1158_v18  ;;  %vm1165_vm13 = vweird.f32 %v1799_v1  ;;  %v1801_v28 = vpop.eup %1800 }
 0xf0a   :  { %vm1166_vm15 = vmor %vm1164_vm14, %vm1165_vm13  ;;  %v1232_v32 = vadd.f32 1.0, %v1801_v28  ;;  %v1803_v33 = vpop.eup %1802 }
 0xf0b   :  { %v1161_v21 = vsub.f32 1.0, %v1160_v20  ;;  %v1233_v34 = vadd.f32 1.0, %v1803_v33 }
 0xf0c   :  { %1804 = vrcp.f32 %v1232_v32  ;;  %v1245_v59 = vand.u32 2147483648, %v1232_v32  ;;  %vm1239_vm2 = vweird.f32 %v1232_v32  ;;  %v1243_v17 = vand.u32 2147483647, %v1232_v32 }
 0xf0d   :  { %v1162_v22 = vmul.f32 %v1799_v1, %v1161_v21  ;;  %1806 = vrcp.f32 %v1233_v34  ;;  %v1260_v61 = vand.u32 2147483648, %v1233_v34  ;;  %vm1254_vm5 = vweird.f32 %v1233_v34 }
 0xf0e   :  { %v1246_v62 = vor.u32 1.1754944e-38, %v1245_v59  ;;  %v1258_v23 = vand.u32 2147483647, %v1233_v34  ;;  %vm1244_vm6 = vcmp.eq.f32.partialorder %v1243_v17, 8.507059e+37 }
 0xf0f   :  { %v1163_v25 = vadd.f32 %v1799_v1, %v1162_v22  ;;  %v1261_v45 = vor.u32 1.1754944e-38, %v1260_v61 }
 0xf10   :  { %vm1259_vm8 = vcmp.eq.f32.partialorder %v1258_v23, 8.507059e+37 }
 0xf11   :  { %v1167_v27 = vsel %vm1166_vm15, %v1799_v1, %v1163_v25 }
 0xf12   :  { %v2213_v29 = vsel %vm1169_vm0, %v1171_v60, %v1167_v27  ;;  %v1805_v36 = vpop.eup %1804 }
 0xf13   :  { %v1235_v37 = vmul.f32 %v1805_v36, %v1232_v32  ;;  %v1807_v38 = vpop.eup %1806  ;;  %vm1240_vm1 = vweird.f32 %v1805_v36  ;;  %v1175_v48 = vmul.f32 %v2213_v29, %v2186_v55 }
 0xf14   :  { %v1250_v35 = vmul.f32 %v1807_v38, %v1233_v34  ;;  %vm1241_vm3 = vmor %vm1239_vm2, %vm1240_vm1  ;;  %vm1255_vm4 = vweird.f32 %v1807_v38 }
 0xf15   :  { %v1236_v39 = vsub.f32 1.0, %v1235_v37  ;;  %vm1256_vm7 = vmor %vm1254_vm5, %vm1255_vm4 }
 0xf16   :  { %v1251_v41 = vsub.f32 1.0, %v1250_v35 }
 0xf17   :  { %v1237_v3 = vmul.f32 %v1805_v36, %v1236_v39 }
 0xf18   :  { %v1252_v57 = vmul.f32 %v1807_v38, %v1251_v41 }
 0xf19   :  { %v1238_v19 = vadd.f32 %v1805_v36, %v1237_v3 }
 0xf1a   :  { %v1253_v7 = vadd.f32 %v1807_v38, %v1252_v57 }
 0xf1b   :  { %v1242_v24 = vsel %vm1241_vm3, %v1805_v36, %v1238_v19 }
 0xf1c   :  { %v1247_v10 = vsel %vm1244_vm6, %v1246_v62, %v1242_v24  ;;  %v1257_v42 = vsel %vm1256_vm7, %v1807_v38, %v1253_v7 }
 0xf1d   :  { %v1262_v12 = vsel %vm1259_vm8, %v1261_v45, %v1257_v42  ;;  %v1272_v53 = vmul.f32 %v1268_v52, %v1247_v10  ;;  %vm1513_vm8 = vcmask 1040384  }
 0xf1e   :  { %v1273_v2 = vmul.f32 %v1269_v56, %v1262_v12 }
 0xf4e   :  { %v1178_v14 = vpop.permute.xlu2 %1177 }
 0xf4f   :  { %v1180_v30 = vmul.f32 %v1178_v14, %v2213_v29 }
 0xf51   :  { %1182 = vrot.lane.b32.xlu2 %v1180_v30, %s1882_s19 }
 0xf70   :  { %v1277_v63 = vpop.permute.xlu0 %1276 }
 0xf71   :  { %v1282_v43 = vmul.f32 %v1277_v63, %v1247_v10  ;;  %v1279_v46 = vpop.permute.xlu1 %1278 }
 0xf72   :  { %v1283_v47 = vmul.f32 %v1279_v46, %v1262_v12 }
 0xf73   :  { %1286 = vrot.lane.b32.xlu0 %v1282_v43, %s1882_s19 }
 0xf74   :  { %1288 = vrot.lane.b32.xlu1 %v1283_v47, %s1882_s19 }
 0xfab   :  { %v1183_v44 = vpop.permute.xlu2 %1182 }
 0xfac   :  { %v2221_v49 = vadd.f32 %v1183_v44, %v1175_v48 }
 0xfae   :  { %1808 = vtanh.f32 %v2221_v49 }
 0xfb4   :  { %v1809_v50 = vpop.eup %1808 }
 0xfb5   :  { %1188 = vrot.lane.b32.xlu2 %v1809_v50, %s1881_s0 }
 0xfe5   :  { %v1287_v54 = vpop.permute.xlu0 %1286 }
 0xfe6   :  { %v2227_v0 = vadd.f32 %v1287_v54, %v1272_v53  ;;  %v1289_v55 = vpop.permute.xlu1 %1288 }
 0xfe7   :  { %v2230_v6 = vadd.f32 %v1289_v55, %v1273_v2 }
 0xfe8   :  { %1810 = vtanh.f32 %v2227_v0 }
 0xfe9   :  { %1812 = vtanh.f32 %v2230_v6 }
 0xfee   :  { %v1811_v8 = vpop.eup %1810 }
 0xfef   :  { %1298 = vrot.lane.b32.xlu0 %v1811_v8, %s1881_s0  ;;  %v1813_v9 = vpop.eup %1812 }
 0xff0   :  { %1300 = vrot.lane.b32.xlu1 %v1813_v9, %s1881_s0 }
0x100f   :  { %v1189_v4 = vpop.permute.xlu2 %1188 }
0x1010   :  { %v1191_v11 = vmul.f32 %v1189_v4, %v2213_v29 }
0x1012   :  { %v1315_v58 = vrot.slane %v1191_v11, 2 }
0x1014   :  { %1316 = vrot.lane.b32.xlu2 %v1315_v58, %s1881_s0 }
0x1061   :  { %v1299_v16 = vpop.permute.xlu0 %1298 }
0x1062   :  { %v1304_v18 = vmul.f32 %v1299_v16, %v1247_v10  ;;  %v1301_v1 = vpop.permute.xlu1 %1300 }
0x1063   :  { %v1305_v20 = vmul.f32 %v1301_v1, %v1262_v12 }
0x1064   :  { %v1381_v21 = vrot.slane %v1304_v18, 6 }
0x1065   :  { %v1308_v5 = vrot.slane %v1305_v20, 7  ;;  %v1382_v22 = vrot.slane %v1305_v20, 5 }
0x1067   :  { %v1383_v31 = vsel %vm187_vm10, %v1382_v22, %v1381_v21  ;;  %v1310_v25 = vsel %vm1309_vm9, %v1308_v5, %v1304_v18 }
0x1068   :  { %1384 = vrot.lane.b32.xlu0 %v1383_v31, %s1882_s19  ;;  %1311 = vrot.lane.b32.xlu1 %v1310_v25, %s1882_s19 }
0x106e   :  { %v1317_v51 = vpop.permute.xlu2 %1316 }
0x10da   :  { %v1385_v26 = vpop.permute.xlu0 %1384  ;;  %v1312_v27 = vpop.permute.xlu1 %1311 }
0x10db   :  { %v1319_v60 = vsel %vm80_vm11, %v1312_v27, %v1317_v51  ;;  %1638 = vmatmul.msk.f32.vlgmr.msra.gmra.mxu1 %vm80_vm11, %v1385_v26  ;;  %v1458_v51 = vrot.slane %v2230_v6, 7 }
0x10dc   :  { %v1321_v28 = vrot.slane %v1319_v60, 6 }
0x10de   :  { %1636 = vmatmul.msk.f32.vlgmr.msrb.gmra.mxu3 %vm193_vm12, %v1321_v28 }
0x1158   :  { %v1405_v14 = vpop.f32.mrf.mxu1 }
0x1159   :  { %v1409_v29 = vrot.slane %v1405_v14, 1  ;;  %v1410_v30 = vrot.slane %v1405_v14, 2  ;;  %v1457_v14 = vrot.slane %v2227_v0, 7 }
0x115b   :  { %v1413_v32 = vadd.f32 %v1409_v29, %v1937_v15  ;;  %v1414_v33 = vadd.f32 %v1410_v30, %v1934_v13 }
0x115d   :  { %1814 = vtanh.f32 %v1413_v32  ;;  %v1640_v39 = vmul.f32 -1.442695, %v1414_v33  ;;  %v1639_v3 = vmul.f32 -1.442695, %v1413_v32 }
0x115e   :  { %1816 = vtanh.f32 %v1414_v33 }
0x1161   :  { %v1341_v34 = vpop.f32.mrf.mxu3 }
0x1162   :  { %v1342_v36 = vadd.f32 %v2174_v40, %v1341_v34 }
0x1163   :  { %v1815_v37 = vpop.eup %1814 }
0x1164   :  { %v1817_v38 = vpop.eup %1816  ;;  %1818 = vtanh.f32 %v1342_v36  ;;  %1465 = vrot.lane.b32.xlu0 %v1815_v37, %s1881_s0  ;;  %v1637_v19 = vmul.f32 -1.442695, %v1342_v36 }
0x1165   :  { %1467 = vrot.lane.b32.xlu2 %v1817_v38, %s1881_s0  ;;  %1820 = vpow2.f32 %v1640_v39 }
0x116a   :  { %v1819_v35 = vpop.eup %1818 }
0x116b   :  { %1366 = vrot.lane.b32.xlu1 %v1819_v35, %s1881_s0  ;;  %v1821_v15 = vpop.eup %1820 }
0x116c   :  { %v1422_v41 = vadd.f32 1.0, %v1821_v15 }
0x116e   :  { %1822 = vrcp.f32 %v1422_v41  ;;  %v1449_v62 = vand.u32 2147483648, %v1422_v41  ;;  %vm1443_vm13 = vweird.f32 %v1422_v41  ;;  %v1447_v63 = vand.u32 2147483647, %v1422_v41 }
0x116f   :  { %1824 = vpow2.f32 %v1639_v3 }
0x1170   :  { %1826 = vpow2.f32 %v1637_v19  ;;  %v1450_v43 = vor.u32 1.1754944e-38, %v1449_v62  ;;  %vm1448_vm15 = vcmp.eq.f32.partialorder %v1447_v63, 8.507059e+37 }
0x1174   :  { %v1823_v13 = vpop.eup %1822 }
0x1175   :  { %v1439_v57 = vmul.f32 %v1823_v13, %v1422_v41  ;;  %v1825_v17 = vpop.eup %1824  ;;  %vm1444_vm10 = vweird.f32 %v1823_v13 }
0x1176   :  { %v1421_v24 = vadd.f32 1.0, %v1825_v17  ;;  %v1827_v23 = vpop.eup %1826  ;;  %vm1445_vm14 = vmor %vm1443_vm13, %vm1444_vm10  ;;  %vm1588_vm13 = vcmask 254976  }
0x1177   :  { %v1440_v59 = vsub.f32 1.0, %v1439_v57  ;;  %v1347_v42 = vadd.f32 1.0, %v1827_v23 }
0x1178   :  { %1828 = vrcp.f32 %v1421_v24  ;;  %v1434_v2 = vand.u32 2147483648, %v1421_v24  ;;  %vm1428_vm1 = vweird.f32 %v1421_v24  ;;  %v1432_v55 = vand.u32 2147483647, %v1421_v24 }
0x1179   :  { %v1441_v7 = vmul.f32 %v1823_v13, %v1440_v59  ;;  %1830 = vrcp.f32 %v1347_v42  ;;  %v1359_v1 = vand.u32 2147483648, %v1347_v42  ;;  %vm1353_vm5 = vweird.f32 %v1347_v42 }
0x117a   :  { %v1435_v4 = vor.u32 1.1754944e-38, %v1434_v2  ;;  %vm1433_vm3 = vcmp.eq.f32.partialorder %v1432_v55, 8.507059e+37  ;;  %v1357_v20 = vand.u32 2147483647, %v1347_v42  ;;  %v1652_v2 = vld [vmem:[#allocation2 + $0x78] ss:$0 sm:$0xff] }
0x117b   :  { %v1442_v61 = vadd.f32 %v1823_v13, %v1441_v7  ;;  %v1360_v5 = vor.u32 1.1754944e-38, %v1359_v1 }
0x117c   :  { %vm1358_vm7 = vcmp.eq.f32.partialorder %v1357_v20, 8.507059e+37 }
0x117d   :  { %v1446_v10 = vsel %vm1445_vm14, %v1823_v13, %v1442_v61  ;;  %vm1594_vm14 = vcmask 1024  }
0x117e   :  { %v1451_v45 = vsel %vm1448_vm15, %v1450_v43, %v1446_v10  ;;  %v1829_v12 = vpop.eup %1828 }
0x117f   :  { %v1424_v48 = vmul.f32 %v1829_v12, %v1421_v24  ;;  %v1831_v44 = vpop.eup %1830  ;;  %vm1429_vm0 = vweird.f32 %v1829_v12  ;;  %v1462_v26 = vmul.f32 %v1458_v51, %v1451_v45 }
0x1180   :  { %v1349_v52 = vmul.f32 %v1831_v44, %v1347_v42  ;;  %vm1430_vm2 = vmor %vm1428_vm1, %vm1429_vm0  ;;  %vm1354_vm4 = vweird.f32 %v1831_v44 }
0x1181   :  { %v1425_v50 = vsub.f32 1.0, %v1424_v48  ;;  %vm1355_vm6 = vmor %vm1353_vm5, %vm1354_vm4 }
0x1182   :  { %v1350_v54 = vsub.f32 1.0, %v1349_v52 }
0x1183   :  { %v1426_v53 = vmul.f32 %v1829_v12, %v1425_v50 }
0x1184   :  { %v1351_v8 = vmul.f32 %v1831_v44, %v1350_v54 }
0x1185   :  { %v1427_v56 = vadd.f32 %v1829_v12, %v1426_v53 }
0x1186   :  { %v1352_v16 = vadd.f32 %v1831_v44, %v1351_v8 }
0x1187   :  { %v1431_v9 = vsel %vm1430_vm2, %v1829_v12, %v1427_v56 }
0x1188   :  { %v1436_v58 = vsel %vm1433_vm3, %v1435_v4, %v1431_v9  ;;  %v1356_v21 = vsel %vm1355_vm6, %v1831_v44, %v1352_v16 }
0x1189   :  { %v1361_v31 = vsel %vm1358_vm7, %v1360_v5, %v1356_v21  ;;  %v1461_v29 = vmul.f32 %v1457_v14, %v1436_v58  ;;  %v1653_v21 = vld [vmem:[#allocation2 + $0x80] ss:$0 sm:$0xff] }
0x118a   :  { %v1364_v33 = vmul.f32 %v1361_v31, %v2221_v49 }
0x11bf   :  { %v1468_v46 = vpop.permute.xlu2 %1467 }
0x11c0   :  { %v1472_v47 = vmul.f32 %v1468_v46, %v1451_v45 }
0x11c2   :  { %1477 = vrot.lane.b32.xlu2 %v1472_v47, %s1882_s19 }
0x11d6   :  { %v1466_v11 = vpop.permute.xlu0 %1465 }
0x11d7   :  { %v1471_v18 = vmul.f32 %v1466_v11, %v1436_v58 }
0x11d9   :  { %1475 = vrot.lane.b32.xlu0 %v1471_v18, %s1882_s19 }
0x11dd   :  { %v1367_v22 = vpop.permute.xlu1 %1366 }
0x11de   :  { %v1369_v25 = vmul.f32 %v1367_v22, %v1361_v31 }
0x11e0   :  { %1371 = vrot.lane.b32.xlu1 %v1369_v25, %s1882_s19 }
0x121c   :  { %v1478_v27 = vpop.permute.xlu2 %1477 }
0x121d   :  { %v1482_v60 = vadd.f32 %v1478_v27, %v1462_v26 }
0x121f   :  { %1832 = vtanh.f32 %v1482_v60 }
0x1225   :  { %v1833_v28 = vpop.eup %1832 }
0x1226   :  { %1489 = vrot.lane.b32.xlu2 %v1833_v28, %s1881_s0 }
0x124b   :  { %v1476_v30 = vpop.permute.xlu0 %1475 }
0x124c   :  { %v1481_v32 = vadd.f32 %v1476_v30, %v1461_v29 }
0x124e   :  { %1834 = vtanh.f32 %v1481_v32 }
0x1252   :  { %v1372_v34 = vpop.permute.xlu1 %1371 }
0x1253   :  { %v1374_v36 = vadd.f32 %v1372_v34, %v1364_v33 }
0x1254   :  { %v1835_v37 = vpop.eup %1834 }
0x1255   :  { %1836 = vtanh.f32 %v1374_v36  ;;  %1487 = vrot.lane.b32.xlu0 %v1835_v37, %s1881_s0 }
0x125b   :  { %v1837_v6 = vpop.eup %1836 }
0x125c   :  { %1377 = vrot.lane.b32.xlu1 %v1837_v6, %s1881_s0 }
0x1280   :  { %v1490_v38 = vpop.permute.xlu2 %1489 }
0x1281   :  { %v1494_v35 = vmul.f32 %v1490_v38, %v1451_v45 }
0x1283   :  { %v1497_v39 = vrot.slane %v1494_v35, 7 }
0x1285   :  { %1500 = vrot.lane.b32.xlu2 %v1497_v39, %s1882_s19 }
0x12c7   :  { %v1488_v0 = vpop.permute.xlu0 %1487 }
0x12c8   :  { %v1493_v15 = vmul.f32 %v1488_v0, %v1436_v58 }
0x12ca   :  { %1498 = vrot.lane.b32.xlu1 %v1493_v15, %s1882_s19 }
0x12ce   :  { %v1378_v41 = vpop.permute.xlu1 %1377 }
0x12cf   :  { %v1380_v49 = vmul.f32 %v1378_v41, %v1361_v31 }
0x12d1   :  { %v1505_v13 = vrot.slane %v1380_v49, 1 }
0x12d3   :  { %1506 = vrot.lane.b32.xlu0 %v1505_v13, %s1881_s0 }
0x12df   :  { %v1501_v3 = vpop.permute.xlu2 %1500 }
0x133c   :  { %v1499_v57 = vpop.permute.xlu1 %1498 }
0x1345   :  { %v1507_v19 = vpop.permute.xlu0 %1506 }
0x1346   :  { %v1509_v59 = vsel %vm80_vm11, %v1499_v57, %v1507_v19  ;;  %v1510_v17 = vsel %vm80_vm11, %v1501_v3, %v1507_v19 }
0x1347   :  { %v1514_v7 = vrot.slane %v1509_v59, 7  ;;  %v1515_v24 = vrot.slane %v1510_v17, 7 }
0x1349   :  { %v1516_v61 = vsel %vm1513_vm8, %v1514_v7, %v1515_v24 }
0x134a   :  { %1641 = vmatmul.msk.f32.vlgmr.msra.gmra.mxu2 %vm193_vm12, %v1516_v61 }
0x13cd   :  { %v1536_v62 = vpop.f32.mrf.mxu2 }
0x13ce   :  { %v1537_v23 = vadd.f32 %v2174_v40, %v1536_v62 }
0x13d0   :  { %1838 = vtanh.f32 %v1537_v23  ;;  %v1642_v10 = vmul.f32 -1.442695, %v1537_v23 }
0x13d2   :  { %1840 = vpow2.f32 %v1642_v10 }
0x13d6   :  { %v1839_v63 = vpop.eup %1838 }
0x13d7   :  { %1561 = vrot.lane.b32.xlu1 %v1839_v63, %s1881_s0 }
0x13d8   :  { %v1841_v42 = vpop.eup %1840 }
0x13d9   :  { %v1542_v43 = vadd.f32 1.0, %v1841_v42 }
0x13db   :  { %1842 = vrcp.f32 %v1542_v43  ;;  %v1554_v44 = vand.u32 2147483648, %v1542_v43  ;;  %vm1548_vm12 = vweird.f32 %v1542_v43  ;;  %v1552_v50 = vand.u32 2147483647, %v1542_v43 }
0x13dd   :  { %v1555_v52 = vor.u32 1.1754944e-38, %v1554_v44  ;;  %vm1553_vm10 = vcmp.eq.f32.partialorder %v1552_v50, 8.507059e+37 }
0x13df   :  { %1580 = vrot.lane.b32.xlu1 %v1652_v2, %s1883_s20 }
0x13e1   :  { %v1843_v45 = vpop.eup %1842 }
0x13e2   :  { %v1544_v46 = vmul.f32 %v1843_v45, %v1542_v43  ;;  %vm1549_vm11 = vweird.f32 %v1843_v45 }
0x13e3   :  { %vm1550_vm9 = vmor %vm1548_vm12, %vm1549_vm11 }
0x13e4   :  { %v1545_v12 = vsub.f32 1.0, %v1544_v46 }
0x13e6   :  { %v1546_v47 = vmul.f32 %v1843_v45, %v1545_v12 }
0x13e8   :  { %v1547_v48 = vadd.f32 %v1843_v45, %v1546_v47 }
0x13ea   :  { %v1551_v40 = vsel %vm1550_vm9, %v1843_v45, %v1547_v48 }
0x13eb   :  { %v1556_v54 = vsel %vm1553_vm10, %v1555_v52, %v1551_v40 }
0x13ec   :  { %v1559_v55 = vmul.f32 %v1556_v54, %v1374_v36 }
0x1449   :  { %v1562_v53 = vpop.permute.xlu1 %1561 }
0x144a   :  { %v1564_v56 = vmul.f32 %v1562_v53, %v1556_v54 }
0x144c   :  { %1566 = vrot.lane.b32.xlu2 %v1564_v56, %s1882_s19 }
0x1451   :  { %v1581_v58 = vpop.permute.xlu1 %1580 }
0x14a6   :  { %v1567_v8 = vpop.permute.xlu2 %1566 }
0x14a7   :  { %v1569_v9 = vadd.f32 %v1567_v8, %v1559_v55 }
0x14a9   :  { %1844 = vtanh.f32 %v1569_v9 }
0x14af   :  { %v1845_v4 = vpop.eup %1844 }
0x14b0   :  { %1572 = vrot.lane.b32.xlu0 %v1845_v4, %s1881_s0 }
0x1522   :  { %v1573_v11 = vpop.permute.xlu0 %1572 }
0x1523   :  { %v1575_v16 = vmul.f32 %v1573_v11, %v1556_v54 }
0x1525   :  { %v1583_v18 = vmul.f32 %v1581_v58, %v1575_v16 }
0x1527   :  { %1585 = vrot.lane.b32.xlu2 %v1583_v18, %s1882_s19 }
0x1581   :  { %v1586_v1 = vpop.permute.xlu2 %1585 }
0x1582   :  { %v1589_v20 = vsel %vm1588_vm13, %v1586_v1, 0.0 }
0x1583   :  { %1590 = vadd.xlane.f32.xlu0 %v1589_v20 }
0x15f6   :  { %v1591_v5 = vpop.xlane.xlu0 %1590 }
0x15f7   :  { %v1593_v22 = vadd.f32 %v1653_v21, %v1591_v5 }
0x15f9   :  { %1595 = vst.msk [vmem:[%s2274_s2] sm:$0x3] %vm1594_vm14, %v1593_v22 }
0x15fa   :  { %1600 = vsyncpa [#allocation3], 1 }

</bundles_post_ra>
